<compile_context>
chip_gen: v6e
topology: v6e:2x2x1
jax: 0.10.0
libtpu: 0.0.40
codegen_flags: <defaults>
</compile_context>

<pallas_src>
import functools

import jax
import jax.numpy as jnp
from jax.experimental import pallas as pl
from jax.experimental.pallas import tpu as pltpu

_LANE = 128     # vreg lane width
_MXU = 256      # v6e/v7x MXU edge (256x256); 128-granule tiles still OK on v5e


# ---------------------------------------------------------------------------
# helpers
# ---------------------------------------------------------------------------
def _round_up(x, m):
    return ((x + m - 1) // m) * m


def _pick_tile(dim, cap, align=_LANE, prefer=_MXU):
    """Largest tile <= cap: whole (align-rounded) dim if it fits, else the
    largest `prefer`-aligned tile (full MXU passes on v6e/v7x), else the
    largest `align`-aligned tile dividing the padded dim."""
    dal = _round_up(dim, align)
    if dal <= cap:
        return dal
    dpref = _round_up(dim, prefer)
    t = (cap // prefer) * prefer
    while t >= prefer:
        if dpref % t == 0:
            return t
        t -= prefer
    t = (cap // align) * align
    while t > align and dal % t:
        t -= align
    return t


def _pad2(x, rows, cols):
    pr, pc = rows - x.shape[0], cols - x.shape[1]
    if pr or pc:
        x = jnp.pad(x, ((0, pr), (0, pc)))
    return x


def _vmem_limit(tile_bytes):
    """Scoped-VMEM request computed from the double-buffered tile footprint,
    capped below the smallest physical VMEM across generations (v7x: 64 MiB)."""
    need = 2 * tile_bytes + (8 << 20)
    return int(max(24 << 20, min(need, 48 << 20)))


# ---------------------------------------------------------------------------
# Kernel A: tiled fused linear  act(x @ w + b)  [+ fused SSE loss partials]
# ---------------------------------------------------------------------------
def _linear_kernel(*refs, activation, nk, fuse_loss, m_valid, n_valid):
    if fuse_loss:
        if nk == 1:
            x_ref, w_ref, b_ref, t_ref, o_ref, sse_ref = refs
            acc_ref = None
        else:
            x_ref, w_ref, b_ref, t_ref, o_ref, sse_ref, acc_ref = refs
    else:
        if nk == 1:
            x_ref, w_ref, b_ref, o_ref = refs
            acc_ref = None
        else:
            x_ref, w_ref, b_ref, o_ref, acc_ref = refs
        t_ref = sse_ref = None

    # Grid ids read at kernel TOP LEVEL only (never inside pl.when bodies).
    i = pl.program_id(0)
    j = pl.program_id(1)

    def emit(acc):
        y = acc + b_ref[...]
        if activation == "relu":
            y = jnp.maximum(y, 0.0)
        elif activation == "sigmoid":
            y = jax.nn.sigmoid(y)
        o_ref[...] = y.astype(o_ref.dtype)
        if fuse_loss:
            d = y - t_ref[...].astype(jnp.float32)
            d2 = d * d
            tm, tn = d2.shape
            if m_valid is not None:          # mask padded rows out of the loss
                rows = i * tm + jax.lax.broadcasted_iota(jnp.int32, (tm, tn), 0)
                d2 = jnp.where(rows < m_valid, d2, 0.0)
            if n_valid is not None:          # mask padded cols out of the loss
                cols = j * tn + jax.lax.broadcasted_iota(jnp.int32, (tm, tn), 1)
                d2 = jnp.where(cols < n_valid, d2, 0.0)
            sse = jnp.sum(jnp.sum(d2, axis=1, keepdims=True),
                          axis=0, keepdims=True)                  # (1, 1)
            # NOTE: sse block shares the (i, j) index with the main output and
            # is only written in the K-resident finalize (do not change its
            # index_map without revisiting this).
            sse_ref[...] = jnp.broadcast_to(sse, (8, 128))

    if nk == 1:
        # Single-K-tile fast path: no VMEM accumulator round trip.
        emit(jnp.dot(x_ref[...].astype(jnp.bfloat16), w_ref[...],
                     preferred_element_type=jnp.float32))
    else:
        k = pl.program_id(2)

        @pl.when(k == 0)
        def _init():
            acc_ref[...] = jnp.zeros_like(acc_ref)

        acc_ref[...] += jnp.dot(x_ref[...].astype(jnp.bfloat16), w_ref[...],
                                preferred_element_type=jnp.float32)

        @pl.when(k == nk - 1)
        def _finalize():
            emit(acc_ref[...])


def pallas_linear(x, w, b, *, activation=None, target=None, n_valid=None,
                  out_dtype=jnp.float32, tm_cap=256, tn_cap=1024, tk_cap=1024):
    """Tiled act(x @ w + b). x stays f32 in HBM and is cast to bf16 in-kernel;
    w / b may be pre-padded to lane multiples. If `target` is given, also
    returns the fused sum-of-squared-error over the first n_valid columns."""
    m, kdim = x.shape
    n = w.shape[1]
    n_log = n if n_valid is None else n_valid

    tm = _pick_tile(m, tm_cap, align=8, prefer=8)
    tk = _pick_tile(kdim, tk_cap)
    tn = _pick_tile(n, tn_cap)
    mp, kp, np_ = _round_up(m, tm), _round_up(kdim, tk), _round_up(n, tn)
    nm, nn, nk = mp // tm, np_ // tn, kp // tk

    xp = _pad2(x, mp, kp)                                    # f32 LHS
    wp = _pad2(w.astype(jnp.bfloat16), kp, np_)              # no-op if pre-padded
    bp = _pad2(b.astype(jnp.float32).reshape(1, -1), 1, np_)

    fuse = target is not None
    kernel = functools.partial(
        _linear_kernel, activation=activation, nk=nk, fuse_loss=fuse,
        m_valid=m if (fuse and mp > m) else None,
        n_valid=n_log if (fuse and np_ > n_log) else None)

    x_spec = pl.BlockSpec((tm, tk), lambda i, j, kk: (i, kk))
    w_spec = pl.BlockSpec((tk, tn), lambda i, j, kk: (kk, j))
    b_spec = pl.BlockSpec((1, tn), lambda i, j, kk: (0, j))
    o_spec = pl.BlockSpec((tm, tn), lambda i, j, kk: (i, j))

    in_specs = [x_spec, w_spec, b_spec]
    operands = [xp, wp, bp]
    out_shape = jax.ShapeDtypeStruct((mp, np_), out_dtype)
    out_specs = o_spec
    tgt_bytes = 0
    if fuse:
        tp = _pad2(target, mp, np_)
        in_specs.append(pl.BlockSpec((tm, tn), lambda i, j, kk: (i, j)))
        operands.append(tp)
        out_shape = (out_shape,
                     jax.ShapeDtypeStruct((nm * 8, nn * 128), jnp.float32))
        out_specs = (o_spec, pl.BlockSpec((8, 128), lambda i, j, kk: (i, j)))
        tgt_bytes = tp.dtype.itemsize

    out_bytes = jax.dtypes.canonicalize_dtype(out_dtype).itemsize
    tile_bytes = (tm * tk * xp.dtype.itemsize + tk * tn * 2 + tn * 4
                  + tm * tn * (out_bytes + tgt_bytes)
                  + (tm * tn * 4 if nk > 1 else 0))
    bytes_accessed = (xp.size * xp.dtype.itemsize * nn + wp.size * 2
                      + mp * np_ * (out_bytes + tgt_bytes))

    result = pl.pallas_call(
        kernel,
        out_shape=out_shape,
        grid=(nm, nn, nk),
        in_specs=in_specs,
        out_specs=out_specs,
        scratch_shapes=([] if nk == 1
                        else [pltpu.VMEM((tm, tn), jnp.float32)]),
        compiler_params=pltpu.CompilerParams(
            dimension_semantics=("parallel", "parallel", "arbitrary"),
            vmem_limit_bytes=_vmem_limit(tile_bytes)),
        cost_estimate=pl.CostEstimate(
            flops=2 * mp * np_ * kp,
            transcendentals=mp * np_ if activation == "sigmoid" else 0,
            bytes_accessed=bytes_accessed),
    )(*operands)

    if fuse:
        out_p, sse_map = result
        return out_p[:m, :n_log], jnp.sum(sse_map[::8, ::128])
    return result[:m, :n_log]


# ---------------------------------------------------------------------------
# Kernel B: fused encoder + RNN input projection
#           proj = relu(img @ We + be) @ Wz + [vec|act] @ Wva + b
# ---------------------------------------------------------------------------
def _enc_inproj_kernel(*refs, nk):
    if nk == 1:
        img_ref, ew_ref, eb_ref, wz_ref, va_ref, wva_ref, rb_ref, o_ref = refs
        acc_ref = None
    else:
        (img_ref, ew_ref, eb_ref, wz_ref, va_ref, wva_ref, rb_ref, o_ref,
         acc_ref) = refs

    def finalize(acc):
        z = jnp.maximum(acc + eb_ref[...], 0.0)          # relu latent features
        proj = jnp.dot(z.astype(jnp.bfloat16), wz_ref[...],
                       preferred_element_type=jnp.float32)
        proj = proj + jnp.dot(va_ref[...].astype(jnp.bfloat16), wva_ref[...],
                              preferred_element_type=jnp.float32)
        o_ref[...] = proj + rb_ref[...]

    if nk == 1:
        finalize(jnp.dot(img_ref[...].astype(jnp.bfloat16), ew_ref[...],
                         preferred_element_type=jnp.float32))
    else:
        k = pl.program_id(1)

        @pl.when(k == 0)
        def _init():
            acc_ref[...] = jnp.zeros_like(acc_ref)

        acc_ref[...] += jnp.dot(img_ref[...].astype(jnp.bfloat16), ew_ref[...],
                                preferred_element_type=jnp.float32)

        @pl.when(k == nk - 1)
        def _fin():
            finalize(acc_ref[...])


def pallas_encoder_inproj(img_flat, vecact, enc_w, enc_b, wz, wva, rnn_b,
                          *, tm_cap=256, tk_cap=1024):
    """Fused encoder + RNN input projection; the latent z never hits HBM.
    Requires the (pre-padded) latent / hidden / vec+act widths to each fit a
    single lane tile."""
    m, d_img = img_flat.shape
    zp = enc_w.shape[1]
    hp = wz.shape[1]
    kvap = wva.shape[0]
    assert zp <= 512 and hp <= 512 and kvap <= 512, "fused path needs 1-tile Z/H"

    tm = _pick_tile(m, tm_cap, align=8, prefer=8)
    tk = _pick_tile(d_img, tk_cap)
    mp, kp = _round_up(m, tm), _round_up(d_img, tk)
    nm, nk = mp // tm, kp // tk

    imgp = _pad2(img_flat, mp, kp)                  # f32, cast in-kernel
    vap = _pad2(vecact, mp, kvap)                   # tiny (M, Sv+A) operand
    ewp = _pad2(enc_w, kp, zp)                      # no-op when pre-padded

    tile_bytes = (tm * tk * 4 + tk * zp * 2 + zp * 4 + zp * hp * 2
                  + tm * kvap * 4 + kvap * hp * 2 + hp * 4 + tm * hp * 4
                  + (tm * zp * 4 if nk > 1 else 0))

    out = pl.pallas_call(
        functools.partial(_enc_inproj_kernel, nk=nk),
        out_shape=jax.ShapeDtypeStruct((mp, hp), jnp.float32),
        grid=(nm, nk),
        in_specs=[
            pl.BlockSpec((tm, tk), lambda i, k: (i, k)),
            pl.BlockSpec((tk, zp), lambda i, k: (k, 0)),
            pl.BlockSpec((1, zp), lambda i, k: (0, 0)),
            pl.BlockSpec((zp, hp), lambda i, k: (0, 0)),
            pl.BlockSpec((tm, kvap), lambda i, k: (i, 0)),
            pl.BlockSpec((kvap, hp), lambda i, k: (0, 0)),
            pl.BlockSpec((1, hp), lambda i, k: (0, 0)),
        ],
        out_specs=pl.BlockSpec((tm, hp), lambda i, k: (i, 0)),
        scratch_shapes=([] if nk == 1
                        else [pltpu.VMEM((tm, zp), jnp.float32)]),
        compiler_params=pltpu.CompilerParams(
            dimension_semantics=("parallel", "arbitrary"),
            vmem_limit_bytes=_vmem_limit(tile_bytes)),
        cost_estimate=pl.CostEstimate(
            flops=2 * mp * zp * kp + 2 * mp * hp * (zp + kvap),
            transcendentals=0,
            bytes_accessed=imgp.size * 4 + ewp.size * 2 + mp * hp * 4),
    )(imgp, ewp, enc_b, wz, vap, wva, rnn_b)
    return out[:m]


# ---------------------------------------------------------------------------
# Kernel C: dones-resetting recurrence, chunked over time, batch-parallel axis
# ---------------------------------------------------------------------------
def _rnn_kernel(proj_ref, keep_ref, wh_ref, o_ref, h_scratch, *, tc):
    # Re-init the carried hidden state at the first time-chunk of every batch
    # block (time is the inner, "arbitrary" grid axis).
    @pl.when(pl.program_id(1) == 0)
    def _init():
        h_scratch[...] = jnp.zeros_like(h_scratch)

    wh = wh_ref[...]
    # Compile-time unrolled chunk: only a tiny (Bb,H)x(H,H) matmul + tanh per
    # step remains on the sequential path.
    # TODO(synk): at production B*H, switch to lax.fori_loop with partial
    # unroll to bound vreg live ranges.
    for t in range(tc):
        # Convention: a done at step t resets the state *entering* step t.
        h_prev = h_scratch[...] * keep_ref[:, t, :]
        pre = proj_ref[:, t, :] + jnp.dot(h_prev.astype(wh.dtype), wh,
                                          preferred_element_type=jnp.float32)
        h_new = jnp.tanh(pre)
        h_scratch[...] = h_new
        o_ref[:, t, :] = h_new


def _pick_chunk(s):
    for tc in (16, 8):
        if s % tc == 0:
            return tc
    return s      # whole sequence per block keeps the sublane tiling legal


def pallas_rnn(proj_bsh, keep_bs1, wh):
    """proj_bsh: (B,S,Hp) f32; keep_bs1: (B,S,1) f32; wh: (Hp,Hp) bf16."""
    b, s, hp = proj_bsh.shape
    tc = _pick_chunk(s)
    # Batch-parallel leading axis: v7x megacore halves the (time-sequential)
    # recurrence; costs only one extra grid step on single-TC v5e/v6e.
    nb = 2 if b % 2 == 0 else 1
    bb = b // nb
    tile_bytes = bb * tc * hp * 8 + bb * tc * 4 + hp * hp * 2 + bb * hp * 4
    return pl.pallas_call(
        functools.partial(_rnn_kernel, tc=tc),
        out_shape=jax.ShapeDtypeStruct((b, s, hp), jnp.float32),
        grid=(nb, s // tc),
        in_specs=[
            pl.BlockSpec((bb, tc, hp), lambda bi, ci: (bi, ci, 0)),
            pl.BlockSpec((bb, tc, 1), lambda bi, ci: (bi, ci, 0)),
            pl.BlockSpec((hp, hp), lambda bi, ci: (0, 0)),
        ],
        out_specs=pl.BlockSpec((bb, tc, hp), lambda bi, ci: (bi, ci, 0)),
        scratch_shapes=[pltpu.VMEM((bb, hp), jnp.float32)],
        compiler_params=pltpu.CompilerParams(
            dimension_semantics=("parallel", "arbitrary"),
            vmem_limit_bytes=_vmem_limit(tile_bytes)),
    )(proj_bsh, keep_bs1, wh.astype(jnp.bfloat16))


# ---------------------------------------------------------------------------
# WorldModel parameters + forward
# ---------------------------------------------------------------------------
def init_worldmodel_params(key, *, ch, w, h, sv, a, z, hdim):
    """Weights pre-padded to lane multiples and pre-cast to bf16 once, so the
    jitted forward never pays per-call pad/convert passes on weights.
    (For training parity with an f32 PyTorch reference keep f32 masters and
    cast per-use; bf16 masters are an inference-oriented choice.)"""
    d_img = ch * w * h
    dp = _round_up(d_img, _LANE)
    zp = _round_up(z, _LANE)
    hp = _round_up(hdim, _LANE)
    svp = _round_up(sv, _LANE)
    kvap = _round_up(sv + a, _LANE)
    ks = jax.random.split(key, 6)

    def glorot(k, shape, padded):
        fan_in, fan_out = shape
        scale = jnp.sqrt(2.0 / (fan_in + fan_out))
        wgt = jax.random.normal(k, shape, dtype=jnp.float32) * scale
        return _pad2(wgt, *padded).astype(jnp.bfloat16)

    return dict(
        enc_w=glorot(ks[0], (d_img, z), (dp, zp)),
        enc_b=jnp.zeros((1, zp), jnp.float32),
        rnn_wz=glorot(ks[1], (z, hdim), (zp, hp)),
        rnn_wva=glorot(ks[2], (sv + a, hdim), (kvap, hp)),   # [Wv ; Wa] stacked
        rnn_wh=glorot(ks[3], (hdim, hdim), (hp, hp)),
        rnn_b=jnp.zeros((1, hp), jnp.float32),
        dec_img_w=glorot(ks[4], (hdim, d_img), (hp, dp)),
        dec_img_b=jnp.zeros((1, dp), jnp.float32),
        dec_vec_w=glorot(ks[5], (hdim, sv), (hp, svp)),
        dec_vec_b=jnp.zeros((1, svp), jnp.float32),
    )


def worldmodel_forward(params, img, vecobs, action, dones, targets=None, *,
                       hdim):
    """Matches WorldModel.forward: returns img_pred, vecobs_pred, loss, h."""
    b, s, ch, wdim, hdim_img = img.shape
    sv = vecobs.shape[-1]
    a_dim = action.shape[-1]
    d_img = ch * wdim * hdim_img
    m = b * s
    hp = params["rnn_wh"].shape[0]

    if targets is None:
        img_tgt, vec_tgt = img, vecobs
    else:
        img_tgt, vec_tgt = targets

    img_flat = img.reshape(m, d_img).astype(jnp.float32)
    vecact = jnp.concatenate([vecobs.reshape(m, sv).astype(jnp.float32),
                              action.reshape(m, a_dim).astype(jnp.float32)],
                             axis=-1)

    # 1+2. fused encoder + RNN input projection (latent z never hits HBM).
    proj = pallas_encoder_inproj(
        img_flat, vecact, params["enc_w"], params["enc_b"],
        params["rnn_wz"], params["rnn_wva"], params["rnn_b"])
    proj = proj.reshape(b, s, hp)

    # 3. recurrence with dones reset, (B,S,Hp) layout, hidden carried in VMEM.
    keep = (1.0 - dones.astype(jnp.float32))[..., None]          # (B,S,1)
    h_bsh = pallas_rnn(proj, keep, params["rnn_wh"])             # (B,S,Hp) f32

    # 4/5. decoder heads with fused SSE loss partials. The big image head is
    # emitted in bf16 to halve its HBM write stream; targets stay in their
    # input dtype (f32) since pre-casting them would cost an extra HBM pass.
    h_flat = h_bsh.reshape(m, hp)                     # f32; cast in-kernel
    img_pred_flat, img_sse = pallas_linear(
        h_flat, params["dec_img_w"], params["dec_img_b"],
        activation="sigmoid", target=img_tgt.reshape(m, d_img),
        n_valid=d_img, out_dtype=jnp.bfloat16)
    vec_pred_flat, vec_sse = pallas_linear(
        h_flat, params["dec_vec_w"], params["dec_vec_b"],
        activation=None, target=vec_tgt.reshape(m, sv),
        n_valid=sv, out_dtype=jnp.float32)

    loss = img_sse / (m * d_img) + vec_sse / (m * sv)

    img_pred = img_pred_flat.reshape(b, s, ch, wdim, hdim_img)
    vecobs_pred = vec_pred_flat.reshape(b, s, sv)
    return img_pred, vecobs_pred, loss, h_bsh[..., :hdim]


if __name__ == "__main__":
    # small shapes consistent with the module docstrings
    # (state dim 2, action dim 3; see get_h / get_next docs)
    B, S = 2, 8
    CH, W, H = 3, 16, 16
    SV, A = 2, 3
    Z, HDIM = 32, 32

    key = jax.random.PRNGKey(0)
    k_img, k_vec, k_act, k_par = jax.random.split(key, 4)

    img = jax.random.uniform(k_img, (B, S, CH, W, H), dtype=jnp.float32)
    vecobs = jax.random.normal(k_vec, (B, S, SV), dtype=jnp.float32)
    action = jax.random.normal(k_act, (B, S, A), dtype=jnp.float32)
    dones = jnp.zeros((B, S), jnp.float32).at[:, S // 2].set(1.0)

    params = init_worldmodel_params(k_par, ch=CH, w=W, h=H, sv=SV, a=A,
                                    z=Z, hdim=HDIM)

    fwd = jax.jit(functools.partial(worldmodel_forward, hdim=HDIM))
    img_pred, vecobs_pred, loss, h_out = fwd(params, img, vecobs, action, dones)

    jax.block_until_ready((img_pred, vecobs_pred, loss, h_out))
    assert img_pred.shape == img.shape
    assert vecobs_pred.shape == vecobs.shape
    assert h_out.shape == (B, S, HDIM)
    assert loss.shape == ()
    assert bool(jnp.isfinite(loss))
    print("KERNEL_OK")
</pallas_src>

<mosaic_0001>
module attributes {stable_mosaic.version = 11 : i64} {
  func.func @_linear_kernel(%arg0: i32, %arg1: i32, %arg2: i32, %arg3: memref<16x128xf32, #tpu.memory_space<vmem>>, %arg4: memref<128x768xbf16, #tpu.memory_space<vmem>>, %arg5: memref<1x768xf32, #tpu.memory_space<vmem>>, %arg6: memref<16x768xf32, #tpu.memory_space<vmem>>, %arg7: memref<16x768xbf16, #tpu.memory_space<vmem>>, %arg8: memref<8x128xf32, #tpu.memory_space<vmem>>) attributes {dimension_semantics = [#tpu.dimension_semantics<parallel>, #tpu.dimension_semantics<parallel>, #tpu.dimension_semantics<arbitrary>], iteration_bounds = array<i64: 1, 1, 1>, scalar_prefetch = 0 : i64, scratch_operands = 0 : i64, tpu.core_type = #tpu.core_type<tc>, window_params = [{transform_indices = @transform_0, window_bounds = array<i64: 16, 128>}, {transform_indices = @transform_1, window_bounds = array<i64: 128, 768>}, {transform_indices = @transform_2, window_bounds = array<i64: 1, 768>}, {transform_indices = @transform_3, window_bounds = array<i64: 16, 768>}, {transform_indices = @transform_4, window_bounds = array<i64: 16, 768>}, {transform_indices = @transform_5, window_bounds = array<i64: 8, 128>}]} {
    %c0 = arith.constant 0 : index
    %c0_0 = arith.constant 0 : index
    %0 = vector.load %arg3[%c0, %c0_0] : memref<16x128xf32, #tpu.memory_space<vmem>>, vector<16x128xf32>
    %1 = arith.truncf %0 : vector<16x128xf32> to vector<16x128xbf16>
    %c0_1 = arith.constant 0 : index
    %c0_2 = arith.constant 0 : index
    %2 = vector.load %arg4[%c0_1, %c0_2] : memref<128x768xbf16, #tpu.memory_space<vmem>>, vector<128x768xbf16>
    %cst = arith.constant dense<0.000000e+00> : vector<16x768xf32>
    %3 = tpu.matmul %1, %2, %cst {dimension_numbers = #tpu.dot_dimension_numbers<[1], [0], [0], [1], [0, 0, 1, 1], [], []>} : vector<16x128xbf16>, vector<128x768xbf16>, vector<16x768xf32> -> vector<16x768xf32>
    %c0_3 = arith.constant 0 : index
    %c0_4 = arith.constant 0 : index
    %4 = vector.load %arg5[%c0_3, %c0_4] : memref<1x768xf32, #tpu.memory_space<vmem>>, vector<1x768xf32>
    %5 = vector.broadcast %4 : vector<1x768xf32> to vector<16x768xf32>
    %6 = arith.addf %3, %5 : vector<16x768xf32>
    %7 = arith.negf %6 : vector<16x768xf32>
    %8 = math.exp %7 : vector<16x768xf32>
    %cst_5 = arith.constant 1.000000e+00 : f32
    %9 = vector.broadcast %cst_5 : f32 to vector<16x768xf32>
    %10 = arith.addf %9, %8 : vector<16x768xf32>
    %11 = arith.divf %9, %10 : vector<16x768xf32>
    %12 = arith.truncf %11 : vector<16x768xf32> to vector<16x768xbf16>
    %c0_6 = arith.constant 0 : index
    %c0_7 = arith.constant 0 : index
    %13 = vector.load %arg7[%c0_6, %c0_7] : memref<16x768xbf16, #tpu.memory_space<vmem>>, vector<16x768xbf16>
    tpu.vector_store %arg7[%c0_6, %c0_7], %12 {strides = array<i32>} : memref<16x768xbf16, #tpu.memory_space<vmem>>, vector<16x768xbf16>,
    %c0_8 = arith.constant 0 : index
    %c0_9 = arith.constant 0 : index
    %14 = vector.load %arg6[%c0_8, %c0_9] : memref<16x768xf32, #tpu.memory_space<vmem>>, vector<16x768xf32>
    %15 = arith.subf %11, %14 : vector<16x768xf32>
    %16 = arith.mulf %15, %15 : vector<16x768xf32>
    %cst_10 = arith.constant dense<0.000000e+00> : vector<16xf32>
    %17 = vector.multi_reduction <add>, %16, %cst_10 [1] : vector<16x768xf32> to vector<16xf32>
    %18 = vector.shape_cast %17 : vector<16xf32> to vector<16x1xf32>
    %cst_11 = arith.constant dense<0.000000e+00> : vector<1xf32>
    %19 = vector.multi_reduction <add>, %18, %cst_11 [0] : vector<16x1xf32> to vector<1xf32>
    %20 = vector.shape_cast %19 : vector<1xf32> to vector<1x1xf32>
    %21 = vector.shape_cast %20 : vector<1x1xf32> to vector<1x1xf32>
    %22 = vector.broadcast %21 : vector<1x1xf32> to vector<8x128xf32>
    %c0_12 = arith.constant 0 : index
    %c0_13 = arith.constant 0 : index
    %23 = vector.load %arg8[%c0_12, %c0_13] : memref<8x128xf32, #tpu.memory_space<vmem>>, vector<8x128xf32>
    tpu.vector_store %arg8[%c0_12, %c0_13], %22 {strides = array<i32>} : memref<8x128xf32, #tpu.memory_space<vmem>>, vector<8x128xf32>,
    return
  }
  func.func @transform_0(%arg0: i32, %arg1: i32, %arg2: i32) -> (i32, i32) {
    %c0_i32 = arith.constant 0 : i32
    return %arg0, %arg2 : i32, i32
  }
  func.func @transform_1(%arg0: i32, %arg1: i32, %arg2: i32) -> (i32, i32) {
    %c0_i32 = arith.constant 0 : i32
    return %arg2, %arg1 : i32, i32
  }
  func.func @transform_2(%arg0: i32, %arg1: i32, %arg2: i32) -> (i32, i32) {
    %c0_i32 = arith.constant 0 : i32
    %c0_i32_0 = arith.constant 0 : i32
    return %c0_i32, %arg1 : i32, i32
  }
  func.func @transform_3(%arg0: i32, %arg1: i32, %arg2: i32) -> (i32, i32) {
    %c0_i32 = arith.constant 0 : i32
    return %arg0, %arg1 : i32, i32
  }
  func.func @transform_4(%arg0: i32, %arg1: i32, %arg2: i32) -> (i32, i32) {
    %c0_i32 = arith.constant 0 : i32
    return %arg0, %arg1 : i32, i32
  }
  func.func @transform_5(%arg0: i32, %arg1: i32, %arg2: i32) -> (i32, i32) {
    %c0_i32 = arith.constant 0 : i32
    return %arg0, %arg1 : i32, i32
  }
}

module attributes {stable_mosaic.version = 11 : i64} {
  func.func @_enc_inproj_kernel(%arg0: i32, %arg1: i32, %arg2: memref<16x768xf32, #tpu.memory_space<vmem>>, %arg3: memref<768x128xbf16, #tpu.memory_space<vmem>>, %arg4: memref<1x128xf32, #tpu.memory_space<vmem>>, %arg5: memref<128x128xbf16, #tpu.memory_space<vmem>>, %arg6: memref<16x128xf32, #tpu.memory_space<vmem>>, %arg7: memref<128x128xbf16, #tpu.memory_space<vmem>>, %arg8: memref<1x128xf32, #tpu.memory_space<vmem>>, %arg9: memref<16x128xf32, #tpu.memory_space<vmem>>) attributes {dimension_semantics = [#tpu.dimension_semantics<parallel>, #tpu.dimension_semantics<arbitrary>], iteration_bounds = array<i64: 1, 1>, scalar_prefetch = 0 : i64, scratch_operands = 0 : i64, tpu.core_type = #tpu.core_type<tc>, window_params = [{transform_indices = @transform_0, window_bounds = array<i64: 16, 768>}, {transform_indices = @transform_1, window_bounds = array<i64: 768, 128>}, {pipeline_mode = #tpu.pipeline_mode<synchronous>, transform_indices = @transform_2, window_bounds = array<i64: 1, 128>}, {pipeline_mode = #tpu.pipeline_mode<synchronous>, transform_indices = @transform_3, window_bounds = array<i64: 128, 128>}, {transform_indices = @transform_4, window_bounds = array<i64: 16, 128>}, {pipeline_mode = #tpu.pipeline_mode<synchronous>, transform_indices = @transform_5, window_bounds = array<i64: 128, 128>}, {pipeline_mode = #tpu.pipeline_mode<synchronous>, transform_indices = @transform_6, window_bounds = array<i64: 1, 128>}, {transform_indices = @transform_7, window_bounds = array<i64: 16, 128>}]} {
    %c0 = arith.constant 0 : index
    %c0_0 = arith.constant 0 : index
    %0 = vector.load %arg2[%c0, %c0_0] : memref<16x768xf32, #tpu.memory_space<vmem>>, vector<16x768xf32>
    %1 = arith.truncf %0 : vector<16x768xf32> to vector<16x768xbf16>
    %c0_1 = arith.constant 0 : index
    %c0_2 = arith.constant 0 : index
    %2 = vector.load %arg3[%c0_1, %c0_2] : memref<768x128xbf16, #tpu.memory_space<vmem>>, vector<768x128xbf16>
    %cst = arith.constant dense<0.000000e+00> : vector<16x128xf32>
    %3 = tpu.matmul %1, %2, %cst {dimension_numbers = #tpu.dot_dimension_numbers<[1], [0], [0], [1], [0, 0, 1, 1], [], []>} : vector<16x768xbf16>, vector<768x128xbf16>, vector<16x128xf32> -> vector<16x128xf32>
    %c0_3 = arith.constant 0 : index
    %c0_4 = arith.constant 0 : index
    %4 = vector.load %arg4[%c0_3, %c0_4] : memref<1x128xf32, #tpu.memory_space<vmem>>, vector<1x128xf32>
    %5 = vector.broadcast %4 : vector<1x128xf32> to vector<16x128xf32>
    %6 = arith.addf %3, %5 : vector<16x128xf32>
    %cst_5 = arith.constant 0.000000e+00 : f32
    %7 = vector.broadcast %cst_5 : f32 to vector<16x128xf32>
    %8 = arith.maximumf %6, %7 : vector<16x128xf32>
    %9 = arith.truncf %8 : vector<16x128xf32> to vector<16x128xbf16>
    %c0_6 = arith.constant 0 : index
    %c0_7 = arith.constant 0 : index
    %10 = vector.load %arg5[%c0_6, %c0_7] : memref<128x128xbf16, #tpu.memory_space<vmem>>, vector<128x128xbf16>
    %cst_8 = arith.constant dense<0.000000e+00> : vector<16x128xf32>
    %11 = tpu.matmul %9, %10, %cst_8 {dimension_numbers = #tpu.dot_dimension_numbers<[1], [0], [0], [1], [0, 0, 1, 1], [], []>} : vector<16x128xbf16>, vector<128x128xbf16>, vector<16x128xf32> -> vector<16x128xf32>
    %c0_9 = arith.constant 0 : index
    %c0_10 = arith.constant 0 : index
    %12 = vector.load %arg6[%c0_9, %c0_10] : memref<16x128xf32, #tpu.memory_space<vmem>>, vector<16x128xf32>
    %13 = arith.truncf %12 : vector<16x128xf32> to vector<16x128xbf16>
    %c0_11 = arith.constant 0 : index
    %c0_12 = arith.constant 0 : index
    %14 = vector.load %arg7[%c0_11, %c0_12] : memref<128x128xbf16, #tpu.memory_space<vmem>>, vector<128x128xbf16>
    %cst_13 = arith.constant dense<0.000000e+00> : vector<16x128xf32>
    %15 = tpu.matmul %13, %14, %cst_13 {dimension_numbers = #tpu.dot_dimension_numbers<[1], [0], [0], [1], [0, 0, 1, 1], [], []>} : vector<16x128xbf16>, vector<128x128xbf16>, vector<16x128xf32> -> vector<16x128xf32>
    %16 = arith.addf %11, %15 : vector<16x128xf32>
    %c0_14 = arith.constant 0 : index
    %c0_15 = arith.constant 0 : index
    %17 = vector.load %arg8[%c0_14, %c0_15] : memref<1x128xf32, #tpu.memory_space<vmem>>, vector<1x128xf32>
    %18 = vector.broadcast %17 : vector<1x128xf32> to vector<16x128xf32>
    %19 = arith.addf %16, %18 : vector<16x128xf32>
    %c0_16 = arith.constant 0 : index
    %c0_17 = arith.constant 0 : index
    %20 = vector.load %arg9[%c0_16, %c0_17] : memref<16x128xf32, #tpu.memory_space<vmem>>, vector<16x128xf32>
    tpu.vector_store %arg9[%c0_16, %c0_17], %19 {strides = array<i32>} : memref<16x128xf32, #tpu.memory_space<vmem>>, vector<16x128xf32>,
    return
  }
  func.func @transform_0(%arg0: i32, %arg1: i32) -> (i32, i32) {
    %c0_i32 = arith.constant 0 : i32
    return %arg0, %arg1 : i32, i32
  }
  func.func @transform_1(%arg0: i32, %arg1: i32) -> (i32, i32) {
    %c0_i32 = arith.constant 0 : i32
    %c0_i32_0 = arith.constant 0 : i32
    return %arg1, %c0_i32 : i32, i32
  }
  func.func @transform_2(%arg0: i32, %arg1: i32) -> (i32, i32) {
    %c0_i32 = arith.constant 0 : i32
    %c0_i32_0 = arith.constant 0 : i32
    %c0_i32_1 = arith.constant 0 : i32
    return %c0_i32, %c0_i32_0 : i32, i32
  }
  func.func @transform_3(%arg0: i32, %arg1: i32) -> (i32, i32) {
    %c0_i32 = arith.constant 0 : i32
    %c0_i32_0 = arith.constant 0 : i32
    %c0_i32_1 = arith.constant 0 : i32
    return %c0_i32, %c0_i32_0 : i32, i32
  }
  func.func @transform_4(%arg0: i32, %arg1: i32) -> (i32, i32) {
    %c0_i32 = arith.constant 0 : i32
    %c0_i32_0 = arith.constant 0 : i32
    return %arg0, %c0_i32 : i32, i32
  }
  func.func @transform_5(%arg0: i32, %arg1: i32) -> (i32, i32) {
    %c0_i32 = arith.constant 0 : i32
    %c0_i32_0 = arith.constant 0 : i32
    %c0_i32_1 = arith.constant 0 : i32
    return %c0_i32, %c0_i32_0 : i32, i32
  }
  func.func @transform_6(%arg0: i32, %arg1: i32) -> (i32, i32) {
    %c0_i32 = arith.constant 0 : i32
    %c0_i32_0 = arith.constant 0 : i32
    %c0_i32_1 = arith.constant 0 : i32
    return %c0_i32, %c0_i32_0 : i32, i32
  }
  func.func @transform_7(%arg0: i32, %arg1: i32) -> (i32, i32) {
    %c0_i32 = arith.constant 0 : i32
    %c0_i32_0 = arith.constant 0 : i32
    return %arg0, %c0_i32 : i32, i32
  }
}

module attributes {stable_mosaic.version = 11 : i64} {
  func.func @_rnn_kernel(%arg0: i32, %arg1: i32, %arg2: memref<1x8x128xf32, #tpu.memory_space<vmem>>, %arg3: memref<1x8x1xf32, #tpu.memory_space<vmem>>, %arg4: memref<128x128xbf16, #tpu.memory_space<vmem>>, %arg5: memref<1x8x128xf32, #tpu.memory_space<vmem>>, %arg6: memref<1x128xf32, #tpu.memory_space<vmem>>) attributes {dimension_semantics = [#tpu.dimension_semantics<parallel>, #tpu.dimension_semantics<arbitrary>], iteration_bounds = array<i64: 2, 1>, scalar_prefetch = 0 : i64, scratch_operands = 1 : i64, tpu.core_type = #tpu.core_type<tc>, window_params = [{transform_indices = @transform_0, window_bounds = array<i64: 1, 8, 128>}, {transform_indices = @transform_1, window_bounds = array<i64: 1, 8, 1>}, {pipeline_mode = #tpu.pipeline_mode<synchronous>, transform_indices = @transform_2, window_bounds = array<i64: 128, 128>}, {transform_indices = @transform_3, window_bounds = array<i64: 1, 8, 128>}]} {
    %c0_i32 = arith.constant 0 : i32
    %0 = arith.cmpi eq, %arg1, %c0_i32 : i32
    %1 = arith.extui %0 : i1 to i32
    %c0_i32_0 = arith.constant 0 : i32
    %2 = arith.cmpi ne, %1, %c0_i32_0 : i32
    scf.if %2 {
      %cst_106 = arith.constant 0.000000e+00 : f32
      %124 = vector.broadcast %cst_106 : f32 to vector<1x128xf32>
      %c0_107 = arith.constant 0 : index
      %c0_108 = arith.constant 0 : index
      %125 = vector.load %arg6[%c0_107, %c0_108] : memref<1x128xf32, #tpu.memory_space<vmem>>, vector<1x128xf32>
      tpu.vector_store %arg6[%c0_107, %c0_108], %124 {strides = array<i32>} : memref<1x128xf32, #tpu.memory_space<vmem>>, vector<1x128xf32>,
    } else {
    }
    %c0 = arith.constant 0 : index
    %c0_1 = arith.constant 0 : index
    %3 = vector.load %arg4[%c0, %c0_1] : memref<128x128xbf16, #tpu.memory_space<vmem>>, vector<128x128xbf16>
    %c0_2 = arith.constant 0 : index
    %c0_3 = arith.constant 0 : index
    %4 = vector.load %arg6[%c0_2, %c0_3] : memref<1x128xf32, #tpu.memory_space<vmem>>, vector<1x128xf32>
    %c0_4 = arith.constant 0 : index
    %c0_5 = arith.constant 0 : index
    %c0_6 = arith.constant 0 : index
    %5 = vector.load %arg3[%c0_4, %c0_5, %c0_6] : memref<1x8x1xf32, #tpu.memory_space<vmem>>, vector<1x1x1xf32>
    %6 = vector.shape_cast %5 : vector<1x1x1xf32> to vector<1x1xf32>
    %7 = vector.broadcast %6 : vector<1x1xf32> to vector<1x128xf32>
    %8 = arith.mulf %4, %7 : vector<1x128xf32>
    %c0_7 = arith.constant 0 : index
    %c0_8 = arith.constant 0 : index
    %c0_9 = arith.constant 0 : index
    %9 = vector.load %arg2[%c0_7, %c0_8, %c0_9] : memref<1x8x128xf32, #tpu.memory_space<vmem>>, vector<1x1x128xf32>
    %10 = vector.shape_cast %9 : vector<1x1x128xf32> to vector<1x128xf32>
    %11 = arith.truncf %8 : vector<1x128xf32> to vector<1x128xbf16>
    %cst = arith.constant dense<0.000000e+00> : vector<1x128xf32>
    %12 = tpu.matmul %11, %3, %cst {dimension_numbers = #tpu.dot_dimension_numbers<[1], [0], [0], [1], [0, 0, 1, 1], [], []>} : vector<1x128xbf16>, vector<128x128xbf16>, vector<1x128xf32> -> vector<1x128xf32>
    %13 = arith.addf %10, %12 : vector<1x128xf32>
    %14 = math.tanh %13 : vector<1x128xf32>
    %c0_10 = arith.constant 0 : index
    %c0_11 = arith.constant 0 : index
    %15 = vector.load %arg6[%c0_10, %c0_11] : memref<1x128xf32, #tpu.memory_space<vmem>>, vector<1x128xf32>
    tpu.vector_store %arg6[%c0_10, %c0_11], %14 {strides = array<i32>} : memref<1x128xf32, #tpu.memory_space<vmem>>, vector<1x128xf32>,
    %c0_12 = arith.constant 0 : index
    %c0_13 = arith.constant 0 : index
    %c0_14 = arith.constant 0 : index
    %16 = vector.load %arg5[%c0_12, %c0_13, %c0_14] : memref<1x8x128xf32, #tpu.memory_space<vmem>>, vector<1x1x128xf32>
    %17 = vector.shape_cast %16 : vector<1x1x128xf32> to vector<1x128xf32>
    %18 = vector.shape_cast %14 : vector<1x128xf32> to vector<1x1x128xf32>
    tpu.vector_store %arg5[%c0_12, %c0_13, %c0_14], %18 {strides = array<i32>} : memref<1x8x128xf32, #tpu.memory_space<vmem>>, vector<1x1x128xf32>,
    %c0_15 = arith.constant 0 : index
    %c0_16 = arith.constant 0 : index
    %19 = vector.load %arg6[%c0_15, %c0_16] : memref<1x128xf32, #tpu.memory_space<vmem>>, vector<1x128xf32>
    %c0_17 = arith.constant 0 : index
    %c1 = arith.constant 1 : index
    %c0_18 = arith.constant 0 : index
    %20 = vector.load %arg3[%c0_17, %c1, %c0_18] : memref<1x8x1xf32, #tpu.memory_space<vmem>>, vector<1x1x1xf32>
    %21 = vector.shape_cast %20 : vector<1x1x1xf32> to vector<1x1xf32>
    %22 = vector.broadcast %21 : vector<1x1xf32> to vector<1x128xf32>
    %23 = arith.mulf %19, %22 : vector<1x128xf32>
    %c0_19 = arith.constant 0 : index
    %c1_20 = arith.constant 1 : index
    %c0_21 = arith.constant 0 : index
    %24 = vector.load %arg2[%c0_19, %c1_20, %c0_21] : memref<1x8x128xf32, #tpu.memory_space<vmem>>, vector<1x1x128xf32>
    %25 = vector.shape_cast %24 : vector<1x1x128xf32> to vector<1x128xf32>
    %26 = arith.truncf %23 : vector<1x128xf32> to vector<1x128xbf16>
    %cst_22 = arith.constant dense<0.000000e+00> : vector<1x128xf32>
    %27 = tpu.matmul %26, %3, %cst_22 {dimension_numbers = #tpu.dot_dimension_numbers<[1], [0], [0], [1], [0, 0, 1, 1], [], []>} : vector<1x128xbf16>, vector<128x128xbf16>, vector<1x128xf32> -> vector<1x128xf32>
    %28 = arith.addf %25, %27 : vector<1x128xf32>
    %29 = math.tanh %28 : vector<1x128xf32>
    %c0_23 = arith.constant 0 : index
    %c0_24 = arith.constant 0 : index
    %30 = vector.load %arg6[%c0_23, %c0_24] : memref<1x128xf32, #tpu.memory_space<vmem>>, vector<1x128xf32>
    tpu.vector_store %arg6[%c0_23, %c0_24], %29 {strides = array<i32>} : memref<1x128xf32, #tpu.memory_space<vmem>>, vector<1x128xf32>,
    %c0_25 = arith.constant 0 : index
    %c1_26 = arith.constant 1 : index
    %c0_27 = arith.constant 0 : index
    %31 = vector.load %arg5[%c0_25, %c1_26, %c0_27] : memref<1x8x128xf32, #tpu.memory_space<vmem>>, vector<1x1x128xf32>
    %32 = vector.shape_cast %31 : vector<1x1x128xf32> to vector<1x128xf32>
    %33 = vector.shape_cast %29 : vector<1x128xf32> to vector<1x1x128xf32>
    tpu.vector_store %arg5[%c0_25, %c1_26, %c0_27], %33 {strides = array<i32>} : memref<1x8x128xf32, #tpu.memory_space<vmem>>, vector<1x1x128xf32>,
    %c0_28 = arith.constant 0 : index
    %c0_29 = arith.constant 0 : index
    %34 = vector.load %arg6[%c0_28, %c0_29] : memref<1x128xf32, #tpu.memory_space<vmem>>, vector<1x128xf32>
    %c0_30 = arith.constant 0 : index
    %c2 = arith.constant 2 : index
    %c0_31 = arith.constant 0 : index
    %35 = vector.load %arg3[%c0_30, %c2, %c0_31] : memref<1x8x1xf32, #tpu.memory_space<vmem>>, vector<1x1x1xf32>
    %36 = vector.shape_cast %35 : vector<1x1x1xf32> to vector<1x1xf32>
    %37 = vector.broadcast %36 : vector<1x1xf32> to vector<1x128xf32>
    %38 = arith.mulf %34, %37 : vector<1x128xf32>
    %c0_32 = arith.constant 0 : index
    %c2_33 = arith.constant 2 : index
    %c0_34 = arith.constant 0 : index
    %39 = vector.load %arg2[%c0_32, %c2_33, %c0_34] : memref<1x8x128xf32, #tpu.memory_space<vmem>>, vector<1x1x128xf32>
    %40 = vector.shape_cast %39 : vector<1x1x128xf32> to vector<1x128xf32>
    %41 = arith.truncf %38 : vector<1x128xf32> to vector<1x128xbf16>
    %cst_35 = arith.constant dense<0.000000e+00> : vector<1x128xf32>
    %42 = tpu.matmul %41, %3, %cst_35 {dimension_numbers = #tpu.dot_dimension_numbers<[1], [0], [0], [1], [0, 0, 1, 1], [], []>} : vector<1x128xbf16>, vector<128x128xbf16>, vector<1x128xf32> -> vector<1x128xf32>
    %43 = arith.addf %40, %42 : vector<1x128xf32>
    %44 = math.tanh %43 : vector<1x128xf32>
    %c0_36 = arith.constant 0 : index
    %c0_37 = arith.constant 0 : index
    %45 = vector.load %arg6[%c0_36, %c0_37] : memref<1x128xf32, #tpu.memory_space<vmem>>, vector<1x128xf32>
    tpu.vector_store %arg6[%c0_36, %c0_37], %44 {strides = array<i32>} : memref<1x128xf32, #tpu.memory_space<vmem>>, vector<1x128xf32>,
    %c0_38 = arith.constant 0 : index
    %c2_39 = arith.constant 2 : index
    %c0_40 = arith.constant 0 : index
    %46 = vector.load %arg5[%c0_38, %c2_39, %c0_40] : memref<1x8x128xf32, #tpu.memory_space<vmem>>, vector<1x1x128xf32>
    %47 = vector.shape_cast %46 : vector<1x1x128xf32> to vector<1x128xf32>
    %48 = vector.shape_cast %44 : vector<1x128xf32> to vector<1x1x128xf32>
    tpu.vector_store %arg5[%c0_38, %c2_39, %c0_40], %48 {strides = array<i32>} : memref<1x8x128xf32, #tpu.memory_space<vmem>>, vector<1x1x128xf32>,
    %c0_41 = arith.constant 0 : index
    %c0_42 = arith.constant 0 : index
    %49 = vector.load %arg6[%c0_41, %c0_42] : memref<1x128xf32, #tpu.memory_space<vmem>>, vector<1x128xf32>
    %c0_43 = arith.constant 0 : index
    %c3 = arith.constant 3 : index
    %c0_44 = arith.constant 0 : index
    %50 = vector.load %arg3[%c0_43, %c3, %c0_44] : memref<1x8x1xf32, #tpu.memory_space<vmem>>, vector<1x1x1xf32>
    %51 = vector.shape_cast %50 : vector<1x1x1xf32> to vector<1x1xf32>
    %52 = vector.broadcast %51 : vector<1x1xf32> to vector<1x128xf32>
    %53 = arith.mulf %49, %52 : vector<1x128xf32>
    %c0_45 = arith.constant 0 : index
    %c3_46 = arith.constant 3 : index
    %c0_47 = arith.constant 0 : index
    %54 = vector.load %arg2[%c0_45, %c3_46, %c0_47] : memref<1x8x128xf32, #tpu.memory_space<vmem>>, vector<1x1x128xf32>
    %55 = vector.shape_cast %54 : vector<1x1x128xf32> to vector<1x128xf32>
    %56 = arith.truncf %53 : vector<1x128xf32> to vector<1x128xbf16>
    %cst_48 = arith.constant dense<0.000000e+00> : vector<1x128xf32>
    %57 = tpu.matmul %56, %3, %cst_48 {dimension_numbers = #tpu.dot_dimension_numbers<[1], [0], [0], [1], [0, 0, 1, 1], [], []>} : vector<1x128xbf16>, vector<128x128xbf16>, vector<1x128xf32> -> vector<1x128xf32>
    %58 = arith.addf %55, %57 : vector<1x128xf32>
    %59 = math.tanh %58 : vector<1x128xf32>
    %c0_49 = arith.constant 0 : index
    %c0_50 = arith.constant 0 : index
    %60 = vector.load %arg6[%c0_49, %c0_50] : memref<1x128xf32, #tpu.memory_space<vmem>>, vector<1x128xf32>
    tpu.vector_store %arg6[%c0_49, %c0_50], %59 {strides = array<i32>} : memref<1x128xf32, #tpu.memory_space<vmem>>, vector<1x128xf32>,
    %c0_51 = arith.constant 0 : index
    %c3_52 = arith.constant 3 : index
    %c0_53 = arith.constant 0 : index
    %61 = vector.load %arg5[%c0_51, %c3_52, %c0_53] : memref<1x8x128xf32, #tpu.memory_space<vmem>>, vector<1x1x128xf32>
    %62 = vector.shape_cast %61 : vector<1x1x128xf32> to vector<1x128xf32>
    %63 = vector.shape_cast %59 : vector<1x128xf32> to vector<1x1x128xf32>
    tpu.vector_store %arg5[%c0_51, %c3_52, %c0_53], %63 {strides = array<i32>} : memref<1x8x128xf32, #tpu.memory_space<vmem>>, vector<1x1x128xf32>,
    %c0_54 = arith.constant 0 : index
    %c0_55 = arith.constant 0 : index
    %64 = vector.load %arg6[%c0_54, %c0_55] : memref<1x128xf32, #tpu.memory_space<vmem>>, vector<1x128xf32>
    %c0_56 = arith.constant 0 : index
    %c4 = arith.constant 4 : index
    %c0_57 = arith.constant 0 : index
    %65 = vector.load %arg3[%c0_56, %c4, %c0_57] : memref<1x8x1xf32, #tpu.memory_space<vmem>>, vector<1x1x1xf32>
    %66 = vector.shape_cast %65 : vector<1x1x1xf32> to vector<1x1xf32>
    %67 = vector.broadcast %66 : vector<1x1xf32> to vector<1x128xf32>
    %68 = arith.mulf %64, %67 : vector<1x128xf32>
    %c0_58 = arith.constant 0 : index
    %c4_59 = arith.constant 4 : index
    %c0_60 = arith.constant 0 : index
    %69 = vector.load %arg2[%c0_58, %c4_59, %c0_60] : memref<1x8x128xf32, #tpu.memory_space<vmem>>, vector<1x1x128xf32>
    %70 = vector.shape_cast %69 : vector<1x1x128xf32> to vector<1x128xf32>
    %71 = arith.truncf %68 : vector<1x128xf32> to vector<1x128xbf16>
    %cst_61 = arith.constant dense<0.000000e+00> : vector<1x128xf32>
    %72 = tpu.matmul %71, %3, %cst_61 {dimension_numbers = #tpu.dot_dimension_numbers<[1], [0], [0], [1], [0, 0, 1, 1], [], []>} : vector<1x128xbf16>, vector<128x128xbf16>, vector<1x128xf32> -> vector<1x128xf32>
    %73 = arith.addf %70, %72 : vector<1x128xf32>
    %74 = math.tanh %73 : vector<1x128xf32>
    %c0_62 = arith.constant 0 : index
    %c0_63 = arith.constant 0 : index
    %75 = vector.load %arg6[%c0_62, %c0_63] : memref<1x128xf32, #tpu.memory_space<vmem>>, vector<1x128xf32>
    tpu.vector_store %arg6[%c0_62, %c0_63], %74 {strides = array<i32>} : memref<1x128xf32, #tpu.memory_space<vmem>>, vector<1x128xf32>,
    %c0_64 = arith.constant 0 : index
    %c4_65 = arith.constant 4 : index
    %c0_66 = arith.constant 0 : index
    %76 = vector.load %arg5[%c0_64, %c4_65, %c0_66] : memref<1x8x128xf32, #tpu.memory_space<vmem>>, vector<1x1x128xf32>
    %77 = vector.shape_cast %76 : vector<1x1x128xf32> to vector<1x128xf32>
    %78 = vector.shape_cast %74 : vector<1x128xf32> to vector<1x1x128xf32>
    tpu.vector_store %arg5[%c0_64, %c4_65, %c0_66], %78 {strides = array<i32>} : memref<1x8x128xf32, #tpu.memory_space<vmem>>, vector<1x1x128xf32>,
    %c0_67 = arith.constant 0 : index
    %c0_68 = arith.constant 0 : index
    %79 = vector.load %arg6[%c0_67, %c0_68] : memref<1x128xf32, #tpu.memory_space<vmem>>, vector<1x128xf32>
    %c0_69 = arith.constant 0 : index
    %c5 = arith.constant 5 : index
    %c0_70 = arith.constant 0 : index
    %80 = vector.load %arg3[%c0_69, %c5, %c0_70] : memref<1x8x1xf32, #tpu.memory_space<vmem>>, vector<1x1x1xf32>
    %81 = vector.shape_cast %80 : vector<1x1x1xf32> to vector<1x1xf32>
    %82 = vector.broadcast %81 : vector<1x1xf32> to vector<1x128xf32>
    %83 = arith.mulf %79, %82 : vector<1x128xf32>
    %c0_71 = arith.constant 0 : index
    %c5_72 = arith.constant 5 : index
    %c0_73 = arith.constant 0 : index
    %84 = vector.load %arg2[%c0_71, %c5_72, %c0_73] : memref<1x8x128xf32, #tpu.memory_space<vmem>>, vector<1x1x128xf32>
    %85 = vector.shape_cast %84 : vector<1x1x128xf32> to vector<1x128xf32>
    %86 = arith.truncf %83 : vector<1x128xf32> to vector<1x128xbf16>
    %cst_74 = arith.constant dense<0.000000e+00> : vector<1x128xf32>
    %87 = tpu.matmul %86, %3, %cst_74 {dimension_numbers = #tpu.dot_dimension_numbers<[1], [0], [0], [1], [0, 0, 1, 1], [], []>} : vector<1x128xbf16>, vector<128x128xbf16>, vector<1x128xf32> -> vector<1x128xf32>
    %88 = arith.addf %85, %87 : vector<1x128xf32>
    %89 = math.tanh %88 : vector<1x128xf32>
    %c0_75 = arith.constant 0 : index
    %c0_76 = arith.constant 0 : index
    %90 = vector.load %arg6[%c0_75, %c0_76] : memref<1x128xf32, #tpu.memory_space<vmem>>, vector<1x128xf32>
    tpu.vector_store %arg6[%c0_75, %c0_76], %89 {strides = array<i32>} : memref<1x128xf32, #tpu.memory_space<vmem>>, vector<1x128xf32>,
    %c0_77 = arith.constant 0 : index
    %c5_78 = arith.constant 5 : index
    %c0_79 = arith.constant 0 : index
    %91 = vector.load %arg5[%c0_77, %c5_78, %c0_79] : memref<1x8x128xf32, #tpu.memory_space<vmem>>, vector<1x1x128xf32>
    %92 = vector.shape_cast %91 : vector<1x1x128xf32> to vector<1x128xf32>
    %93 = vector.shape_cast %89 : vector<1x128xf32> to vector<1x1x128xf32>
    tpu.vector_store %arg5[%c0_77, %c5_78, %c0_79], %93 {strides = array<i32>} : memref<1x8x128xf32, #tpu.memory_space<vmem>>, vector<1x1x128xf32>,
    %c0_80 = arith.constant 0 : index
    %c0_81 = arith.constant 0 : index
    %94 = vector.load %arg6[%c0_80, %c0_81] : memref<1x128xf32, #tpu.memory_space<vmem>>, vector<1x128xf32>
    %c0_82 = arith.constant 0 : index
    %c6 = arith.constant 6 : index
    %c0_83 = arith.constant 0 : index
    %95 = vector.load %arg3[%c0_82, %c6, %c0_83] : memref<1x8x1xf32, #tpu.memory_space<vmem>>, vector<1x1x1xf32>
    %96 = vector.shape_cast %95 : vector<1x1x1xf32> to vector<1x1xf32>
    %97 = vector.broadcast %96 : vector<1x1xf32> to vector<1x128xf32>
    %98 = arith.mulf %94, %97 : vector<1x128xf32>
    %c0_84 = arith.constant 0 : index
    %c6_85 = arith.constant 6 : index
    %c0_86 = arith.constant 0 : index
    %99 = vector.load %arg2[%c0_84, %c6_85, %c0_86] : memref<1x8x128xf32, #tpu.memory_space<vmem>>, vector<1x1x128xf32>
    %100 = vector.shape_cast %99 : vector<1x1x128xf32> to vector<1x128xf32>
    %101 = arith.truncf %98 : vector<1x128xf32> to vector<1x128xbf16>
    %cst_87 = arith.constant dense<0.000000e+00> : vector<1x128xf32>
    %102 = tpu.matmul %101, %3, %cst_87 {dimension_numbers = #tpu.dot_dimension_numbers<[1], [0], [0], [1], [0, 0, 1, 1], [], []>} : vector<1x128xbf16>, vector<128x128xbf16>, vector<1x128xf32> -> vector<1x128xf32>
    %103 = arith.addf %100, %102 : vector<1x128xf32>
    %104 = math.tanh %103 : vector<1x128xf32>
    %c0_88 = arith.constant 0 : index
    %c0_89 = arith.constant 0 : index
    %105 = vector.load %arg6[%c0_88, %c0_89] : memref<1x128xf32, #tpu.memory_space<vmem>>, vector<1x128xf32>
    tpu.vector_store %arg6[%c0_88, %c0_89], %104 {strides = array<i32>} : memref<1x128xf32, #tpu.memory_space<vmem>>, vector<1x128xf32>,
    %c0_90 = arith.constant 0 : index
    %c6_91 = arith.constant 6 : index
    %c0_92 = arith.constant 0 : index
    %106 = vector.load %arg5[%c0_90, %c6_91, %c0_92] : memref<1x8x128xf32, #tpu.memory_space<vmem>>, vector<1x1x128xf32>
    %107 = vector.shape_cast %106 : vector<1x1x128xf32> to vector<1x128xf32>
    %108 = vector.shape_cast %104 : vector<1x128xf32> to vector<1x1x128xf32>
    tpu.vector_store %arg5[%c0_90, %c6_91, %c0_92], %108 {strides = array<i32>} : memref<1x8x128xf32, #tpu.memory_space<vmem>>, vector<1x1x128xf32>,
    %c0_93 = arith.constant 0 : index
    %c0_94 = arith.constant 0 : index
    %109 = vector.load %arg6[%c0_93, %c0_94] : memref<1x128xf32, #tpu.memory_space<vmem>>, vector<1x128xf32>
    %c0_95 = arith.constant 0 : index
    %c7 = arith.constant 7 : index
    %c0_96 = arith.constant 0 : index
    %110 = vector.load %arg3[%c0_95, %c7, %c0_96] : memref<1x8x1xf32, #tpu.memory_space<vmem>>, vector<1x1x1xf32>
    %111 = vector.shape_cast %110 : vector<1x1x1xf32> to vector<1x1xf32>
    %112 = vector.broadcast %111 : vector<1x1xf32> to vector<1x128xf32>
    %113 = arith.mulf %109, %112 : vector<1x128xf32>
    %c0_97 = arith.constant 0 : index
    %c7_98 = arith.constant 7 : index
    %c0_99 = arith.constant 0 : index
    %114 = vector.load %arg2[%c0_97, %c7_98, %c0_99] : memref<1x8x128xf32, #tpu.memory_space<vmem>>, vector<1x1x128xf32>
    %115 = vector.shape_cast %114 : vector<1x1x128xf32> to vector<1x128xf32>
    %116 = arith.truncf %113 : vector<1x128xf32> to vector<1x128xbf16>
    %cst_100 = arith.constant dense<0.000000e+00> : vector<1x128xf32>
    %117 = tpu.matmul %116, %3, %cst_100 {dimension_numbers = #tpu.dot_dimension_numbers<[1], [0], [0], [1], [0, 0, 1, 1], [], []>} : vector<1x128xbf16>, vector<128x128xbf16>, vector<1x128xf32> -> vector<1x128xf32>
    %118 = arith.addf %115, %117 : vector<1x128xf32>
    %119 = math.tanh %118 : vector<1x128xf32>
    %c0_101 = arith.constant 0 : index
    %c0_102 = arith.constant 0 : index
    %120 = vector.load %arg6[%c0_101, %c0_102] : memref<1x128xf32, #tpu.memory_space<vmem>>, vector<1x128xf32>
    tpu.vector_store %arg6[%c0_101, %c0_102], %119 {strides = array<i32>} : memref<1x128xf32, #tpu.memory_space<vmem>>, vector<1x128xf32>,
    %c0_103 = arith.constant 0 : index
    %c7_104 = arith.constant 7 : index
    %c0_105 = arith.constant 0 : index
    %121 = vector.load %arg5[%c0_103, %c7_104, %c0_105] : memref<1x8x128xf32, #tpu.memory_space<vmem>>, vector<1x1x128xf32>
    %122 = vector.shape_cast %121 : vector<1x1x128xf32> to vector<1x128xf32>
    %123 = vector.shape_cast %119 : vector<1x128xf32> to vector<1x1x128xf32>
    tpu.vector_store %arg5[%c0_103, %c7_104, %c0_105], %123 {strides = array<i32>} : memref<1x8x128xf32, #tpu.memory_space<vmem>>, vector<1x1x128xf32>,
    return
  }
  func.func @transform_0(%arg0: i32, %arg1: i32) -> (i32, i32, i32) {
    %c0_i32 = arith.constant 0 : i32
    %c0_i32_0 = arith.constant 0 : i32
    return %arg0, %arg1, %c0_i32 : i32, i32, i32
  }
  func.func @transform_1(%arg0: i32, %arg1: i32) -> (i32, i32, i32) {
    %c0_i32 = arith.constant 0 : i32
    %c0_i32_0 = arith.constant 0 : i32
    return %arg0, %arg1, %c0_i32 : i32, i32, i32
  }
  func.func @transform_2(%arg0: i32, %arg1: i32) -> (i32, i32) {
    %c0_i32 = arith.constant 0 : i32
    %c0_i32_0 = arith.constant 0 : i32
    %c0_i32_1 = arith.constant 0 : i32
    return %c0_i32, %c0_i32_0 : i32, i32
  }
  func.func @transform_3(%arg0: i32, %arg1: i32) -> (i32, i32, i32) {
    %c0_i32 = arith.constant 0 : i32
    %c0_i32_0 = arith.constant 0 : i32
    return %arg0, %arg1, %c0_i32 : i32, i32, i32
  }
}

module attributes {stable_mosaic.version = 11 : i64} {
  func.func @_linear_kernel(%arg0: i32, %arg1: i32, %arg2: i32, %arg3: memref<16x128xf32, #tpu.memory_space<vmem>>, %arg4: memref<128x128xbf16, #tpu.memory_space<vmem>>, %arg5: memref<1x128xf32, #tpu.memory_space<vmem>>, %arg6: memref<16x128xf32, #tpu.memory_space<vmem>>, %arg7: memref<16x128xf32, #tpu.memory_space<vmem>>, %arg8: memref<8x128xf32, #tpu.memory_space<vmem>>) attributes {dimension_semantics = [#tpu.dimension_semantics<parallel>, #tpu.dimension_semantics<parallel>, #tpu.dimension_semantics<arbitrary>], iteration_bounds = array<i64: 1, 1, 1>, scalar_prefetch = 0 : i64, scratch_operands = 0 : i64, tpu.core_type = #tpu.core_type<tc>, window_params = [{transform_indices = @transform_0, window_bounds = array<i64: 16, 128>}, {transform_indices = @transform_1, window_bounds = array<i64: 128, 128>}, {transform_indices = @transform_2, window_bounds = array<i64: 1, 128>}, {transform_indices = @transform_3, window_bounds = array<i64: 16, 128>}, {transform_indices = @transform_4, window_bounds = array<i64: 16, 128>}, {transform_indices = @transform_5, window_bounds = array<i64: 8, 128>}]} {
    %c0 = arith.constant 0 : index
    %c0_0 = arith.constant 0 : index
    %0 = vector.load %arg3[%c0, %c0_0] : memref<16x128xf32, #tpu.memory_space<vmem>>, vector<16x128xf32>
    %1 = arith.truncf %0 : vector<16x128xf32> to vector<16x128xbf16>
    %c0_1 = arith.constant 0 : index
    %c0_2 = arith.constant 0 : index
    %2 = vector.load %arg4[%c0_1, %c0_2] : memref<128x128xbf16, #tpu.memory_space<vmem>>, vector<128x128xbf16>
    %cst = arith.constant dense<0.000000e+00> : vector<16x128xf32>
    %3 = tpu.matmul %1, %2, %cst {dimension_numbers = #tpu.dot_dimension_numbers<[1], [0], [0], [1], [0, 0, 1, 1], [], []>} : vector<16x128xbf16>, vector<128x128xbf16>, vector<16x128xf32> -> vector<16x128xf32>
    %c0_3 = arith.constant 0 : index
    %c0_4 = arith.constant 0 : index
    %4 = vector.load %arg5[%c0_3, %c0_4] : memref<1x128xf32, #tpu.memory_space<vmem>>, vector<1x128xf32>
    %5 = vector.broadcast %4 : vector<1x128xf32> to vector<16x128xf32>
    %6 = arith.addf %3, %5 : vector<16x128xf32>
    %c0_5 = arith.constant 0 : index
    %c0_6 = arith.constant 0 : index
    %7 = vector.load %arg7[%c0_5, %c0_6] : memref<16x128xf32, #tpu.memory_space<vmem>>, vector<16x128xf32>
    tpu.vector_store %arg7[%c0_5, %c0_6], %6 {strides = array<i32>} : memref<16x128xf32, #tpu.memory_space<vmem>>, vector<16x128xf32>,
    %c0_7 = arith.constant 0 : index
    %c0_8 = arith.constant 0 : index
    %8 = vector.load %arg6[%c0_7, %c0_8] : memref<16x128xf32, #tpu.memory_space<vmem>>, vector<16x128xf32>
    %9 = arith.subf %6, %8 : vector<16x128xf32>
    %10 = arith.mulf %9, %9 : vector<16x128xf32>
    %c128_i32 = arith.constant 128 : i32
    %11 = arith.muli %arg1, %c128_i32 : i32
    %12 = tpu.iota {dimensions = array<i32: 1>} : vector<16x128xi32>
    %13 = vector.broadcast %11 : i32 to vector<16x128xi32>
    %14 = arith.addi %13, %12 : vector<16x128xi32>
    %c2_i32 = arith.constant 2 : i32
    %15 = vector.broadcast %c2_i32 : i32 to vector<16x128xi32>
    %16 = arith.cmpi slt, %14, %15 : vector<16x128xi32>
    %cst_9 = arith.constant 0.000000e+00 : f32
    %17 = vector.broadcast %cst_9 : f32 to vector<16x128xf32>
    %18 = arith.select %16, %10, %17 : vector<16x128xi1>, vector<16x128xf32>
    %cst_10 = arith.constant dense<0.000000e+00> : vector<16xf32>
    %19 = vector.multi_reduction <add>, %18, %cst_10 [1] : vector<16x128xf32> to vector<16xf32>
    %20 = vector.shape_cast %19 : vector<16xf32> to vector<16x1xf32>
    %cst_11 = arith.constant dense<0.000000e+00> : vector<1xf32>
    %21 = vector.multi_reduction <add>, %20, %cst_11 [0] : vector<16x1xf32> to vector<1xf32>
    %22 = vector.shape_cast %21 : vector<1xf32> to vector<1x1xf32>
    %23 = vector.shape_cast %22 : vector<1x1xf32> to vector<1x1xf32>
    %24 = vector.broadcast %23 : vector<1x1xf32> to vector<8x128xf32>
    %c0_12 = arith.constant 0 : index
    %c0_13 = arith.constant 0 : index
    %25 = vector.load %arg8[%c0_12, %c0_13] : memref<8x128xf32, #tpu.memory_space<vmem>>, vector<8x128xf32>
    tpu.vector_store %arg8[%c0_12, %c0_13], %24 {strides = array<i32>} : memref<8x128xf32, #tpu.memory_space<vmem>>, vector<8x128xf32>,
    return
  }
  func.func @transform_0(%arg0: i32, %arg1: i32, %arg2: i32) -> (i32, i32) {
    %c0_i32 = arith.constant 0 : i32
    return %arg0, %arg2 : i32, i32
  }
  func.func @transform_1(%arg0: i32, %arg1: i32, %arg2: i32) -> (i32, i32) {
    %c0_i32 = arith.constant 0 : i32
    return %arg2, %arg1 : i32, i32
  }
  func.func @transform_2(%arg0: i32, %arg1: i32, %arg2: i32) -> (i32, i32) {
    %c0_i32 = arith.constant 0 : i32
    %c0_i32_0 = arith.constant 0 : i32
    return %c0_i32, %arg1 : i32, i32
  }
  func.func @transform_3(%arg0: i32, %arg1: i32, %arg2: i32) -> (i32, i32) {
    %c0_i32 = arith.constant 0 : i32
    return %arg0, %arg1 : i32, i32
  }
  func.func @transform_4(%arg0: i32, %arg1: i32, %arg2: i32) -> (i32, i32) {
    %c0_i32 = arith.constant 0 : i32
    return %arg0, %arg1 : i32, i32
  }
  func.func @transform_5(%arg0: i32, %arg1: i32, %arg2: i32) -> (i32, i32) {
    %c0_i32 = arith.constant 0 : i32
    return %arg0, %arg1 : i32, i32
  }
}

</mosaic_0001>

<bundles_post_ra>
// kernel: worldmodel_forward.6
= control target key start
LH: loop header
LB: loop body
LE: loop exit
PB: predicated region body
PF: predicated region fallthrough
CT: control target
= control target key end

     0   :  { %v845_v1 = vmov 0   ;;  %v73_v52 = vlaneseq  ;;  %s1105_s1 = inlined_call_operand.vmem [shape: bf16[128,768], index: 1, kind: input, shape index: {}]   ;;  %s1106_s0 = inlined_call_operand.vmem [shape: f32[16,128], index: 0, kind: input, shape index: {}]   ;;  %s1107_s2 = inlined_call_operand.vmem [shape: f32[1,768], index: 2, kind: input, shape index: {}]   ;;  %s1108_s4 = inlined_call_operand.vmem [shape: bf16[16,768], index: 4, kind: output, shape index: {0}]   ;;  %s1109_s3 = inlined_call_operand.vmem [shape: f32[16,768], index: 3, kind: input, shape index: {}]   ;;  %s1110_s5 = inlined_call_operand.vmem [shape: f32[8,128], index: 5, kind: output, shape index: {1}]  }
   0x1   :  { %v725_v0 = vld [vmem:[%s1105_s1 + $0x154] ss:$24 sps:$4 sm:$0xff]   ;;  %375 = vmatprep.mubr.bf16.mxu0 %v845_v1  ;;  %418 = vmatprep.mubr.bf16.mxu1 %v845_v1  ;;  %v727_v2 = vld [vmem:[%s1105_s1 + $0x150] ss:$24 sps:$4 sm:$0xff]   ;;  %v728_v3 = vld [vmem:[%s1105_s1 + $0x124] ss:$24 sps:$4 sm:$0xff]  }
   0x2   :  { %343 = vmatprep.subr.bf16.mxu0 %v725_v0  ;;  %v730_v4 = vld [vmem:[%s1105_s1 + $0x15c] ss:$24 sps:$4 sm:$0xff]   ;;  %v732_v5 = vld [vmem:[%s1105_s1 + $0x120] ss:$24 sps:$4 sm:$0xff]   ;;  %v736_v8 = vld [vmem:[%s1105_s1 + $0x12c] ss:$24 sps:$4 sm:$0xff]  }
   0x3   :  { %344 = vmatpush1.bf16.msra.mxu0 %v727_v2  ;;  %v733_v6 = vld [vmem:[%s1105_s1 + $0x158] ss:$24 sps:$4 sm:$0xff]   ;;  %v734_v7 = vld [vmem:[%s1105_s1 + $0xf4] ss:$24 sps:$4 sm:$0xff]   ;;  %386 = vmatprep.subr.bf16.mxu1 %v730_v4  ;;  %v739_v9 = vld [vmem:[%s1105_s1 + $0x128] ss:$24 sps:$4 sm:$0xff]  }
   0x4   :  { %345 = vmatprep.subr.bf16.mxu0 %v728_v3  ;;  %387 = vmatpush1.bf16.msra.mxu1 %v733_v6  ;;  %v738_v10 = vld [vmem:[%s1105_s1 + $0xf0] ss:$24 sps:$4 sm:$0xff]   ;;  %v740_v11 = vld [vmem:[%s1105_s1 + $0xc4] ss:$24 sps:$4 sm:$0xff]   ;;  %v744_v14 = vld [vmem:[%s1105_s1 + $0xc0] ss:$24 sps:$4 sm:$0xff]  }
   0x5   :  { %388 = vmatprep.subr.bf16.mxu1 %v736_v8  ;;  %v742_v12 = vld [vmem:[%s1105_s1 + $0xfc] ss:$24 sps:$4 sm:$0xff]   ;;  %v745_v13 = vld [vmem:[%s1105_s1 + $0xf8] ss:$24 sps:$4 sm:$0xff]   ;;  %v748_v15 = vld [vmem:[%s1105_s1 + $0xcc] ss:$24 sps:$4 sm:$0xff]  }
   0x6   :  { %v746_v16 = vld [vmem:[%s1105_s1 + $0x94] ss:$24 sps:$4 sm:$0xff]   ;;  %v750_v17 = vld [vmem:[%s1105_s1 + $0x90] ss:$24 sps:$4 sm:$0xff]   ;;  %v752_v20 = vld [vmem:[%s1105_s1 + $0x64] ss:$24 sps:$4 sm:$0xff]  }
   0x7   :  { %346 = vmatpush1.bf16.msra.mxu0 %v732_v5  ;;  %v751_v18 = vld [vmem:[%s1105_s1 + $0xc8] ss:$24 sps:$4 sm:$0xff]   ;;  %v754_v19 = vld [vmem:[%s1105_s1 + $0x9c] ss:$24 sps:$4 sm:$0xff]   ;;  %v757_v21 = vld [vmem:[%s1105_s1 + $0x98] ss:$24 sps:$4 sm:$0xff]  }
   0x8   :  { %347 = vmatprep.subr.bf16.mxu0 %v734_v7  ;;  %389 = vmatpush1.bf16.msra.mxu1 %v739_v9  ;;  %v756_v22 = vld [vmem:[%s1105_s1 + $0x60] ss:$24 sps:$4 sm:$0xff]   ;;  %v760_v23 = vld [vmem:[%s1105_s1 + $0x6c] ss:$24 sps:$4 sm:$0xff]   ;;  %v762_v25 = vld [vmem:[%s1105_s1 + $0x30] ss:$24 sps:$4 sm:$0xff]  }
   0x9   :  { %390 = vmatprep.subr.bf16.mxu1 %v742_v12  ;;  %v758_v24 = vld [vmem:[%s1105_s1 + $0x34] ss:$24 sps:$4 sm:$0xff]   ;;  %v763_v26 = vld [vmem:[%s1105_s1 + $0x68] ss:$24 sps:$4 sm:$0xff]   ;;  %v764_v28 = vld [vmem:[%s1105_s1 + $0x4] ss:$24 sps:$4 sm:$0xff]  }
   0xa   :  { %v766_v27 = vld [vmem:[%s1105_s1 + $0x3c] ss:$24 sps:$4 sm:$0xff]   ;;  %v768_v29 = vld [vmem:[%s1105_s1] ss:$24 sps:$4 sm:$0xff]   ;;  %v21_v32 = vld [vmem:[%s1106_s0 + $0x8] sm:$0xff]  ;;  %v1029_v53 = vshrl.u32 %v73_v52, 7 }
   0xb   :  { %348 = vmatpush1.bf16.msra.mxu0 %v738_v10  ;;  %v769_v30 = vld [vmem:[%s1105_s1 + $0x38] ss:$24 sps:$4 sm:$0xff]   ;;  %v20_v31 = vld [vmem:[%s1106_s0] sm:$0xff]  ;;  %v778_v38 = vld [vmem:[%s1105_s1 + $0x134] ss:$24 sps:$4 sm:$0xff]  }
   0xc   :  { %349 = vmatprep.subr.bf16.mxu0 %v740_v11  ;;  %391 = vmatpush1.bf16.msra.mxu1 %v745_v13  ;;  %v770_v33 = vld [vmem:[%s1105_s1 + $0xc] ss:$24 sps:$4 sm:$0xff]   ;;  %v22_v35 = vpack.c.bf16 %v21_v32, %v20_v31  ;;  %v775_v36 = vld [vmem:[%s1105_s1 + $0x8] ss:$24 sps:$4 sm:$0xff]   ;;  %v75_v54 = vsub.s32 0, %v1029_v53  ;;  %v79_v56 = vsub.s32 1, %v1029_v53 }
   0xd   :  { %392 = vmatprep.subr.bf16.mxu1 %v748_v15  ;;  %v774_v34 = vld [vmem:[%s1105_s1 + $0x164] ss:$24 sps:$4 sm:$0xff]   ;;  %v772_v37 = vld [vmem:[%s1105_s1 + $0x160] ss:$24 sps:$4 sm:$0xff]   ;;  %v776_v39 = vld [vmem:[%s1105_s1 + $0x130] ss:$24 sps:$4 sm:$0xff]  }
   0xe   :  { %v781_v40 = vld [vmem:[%s1105_s1 + $0x104] ss:$24 sps:$4 sm:$0xff]   ;;  %v779_v41 = vld [vmem:[%s1105_s1 + $0x100] ss:$24 sps:$4 sm:$0xff]   ;;  %v784_v42 = vld [vmem:[%s1105_s1 + $0xd4] ss:$24 sps:$4 sm:$0xff]  }
   0xf   :  { %350 = vmatpush1.bf16.msra.mxu0 %v744_v14  ;;  %v782_v43 = vld [vmem:[%s1105_s1 + $0xd0] ss:$24 sps:$4 sm:$0xff]   ;;  %v787_v44 = vld [vmem:[%s1105_s1 + $0xa4] ss:$24 sps:$4 sm:$0xff]   ;;  %v785_v45 = vld [vmem:[%s1105_s1 + $0xa0] ss:$24 sps:$4 sm:$0xff]  }
  0x10   :  { %351 = vmatprep.subr.bf16.mxu0 %v746_v16  ;;  %393 = vmatpush1.bf16.msra.mxu1 %v751_v18  ;;  %v790_v46 = vld [vmem:[%s1105_s1 + $0x74] ss:$24 sps:$4 sm:$0xff]   ;;  %v788_v47 = vld [vmem:[%s1105_s1 + $0x70] ss:$24 sps:$4 sm:$0xff]   ;;  %v793_v48 = vld [vmem:[%s1105_s1 + $0x44] ss:$24 sps:$4 sm:$0xff]  }
  0x11   :  { %394 = vmatprep.subr.bf16.mxu1 %v754_v19  ;;  %v791_v49 = vld [vmem:[%s1105_s1 + $0x40] ss:$24 sps:$4 sm:$0xff]   ;;  %v796_v50 = vld [vmem:[%s1105_s1 + $0x14] ss:$24 sps:$4 sm:$0xff]   ;;  %v794_v51 = vld [vmem:[%s1105_s1 + $0x10] ss:$24 sps:$4 sm:$0xff]  }
  0x12   :  { %v1035_v55 = vld [vmem:[%s1107_s2] sm:$0x3f]  ;;  %v83_v57 = vsub.s32 2, %v1029_v53  ;;  %v87_v59 = vsub.s32 3, %v1029_v53 }
  0x13   :  { %352 = vmatpush1.bf16.msra.mxu0 %v750_v17  ;;  %v76_v58 = vrot.slane %v1035_v55, %v75_v54  ;;  %v80_v60 = vrot.slane %v1035_v55, %v79_v56 }
  0x14   :  { %353 = vmatprep.subr.bf16.mxu0 %v752_v20  ;;  %395 = vmatpush1.bf16.msra.mxu1 %v757_v21  ;;  %v84_v62 = vrot.slane %v1035_v55, %v83_v57 }
  0x15   :  { %396 = vmatprep.subr.bf16.mxu1 %v760_v23 }
  0x17   :  { %354 = vmatpush1.bf16.msra.mxu0 %v756_v22 }
  0x18   :  { %355 = vmatprep.subr.bf16.mxu0 %v758_v24  ;;  %397 = vmatpush1.bf16.msra.mxu1 %v763_v26 }
  0x19   :  { %398 = vmatprep.subr.bf16.mxu1 %v766_v27 }
  0x1b   :  { %356 = vmatpush1.bf16.msra.mxu0 %v762_v25 }
  0x1c   :  { %357 = vmatprep.subr.bf16.mxu0 %v764_v28  ;;  %399 = vmatpush1.bf16.msra.mxu1 %v769_v30 }
  0x1d   :  { %400 = vmatprep.subr.bf16.mxu1 %v770_v33 }
  0x1f   :  { %358 = vmatpush1.bf16.msra.mxu0 %v768_v29 }
  0x20   :  { %429 = vmatprep.subr.bf16.mxu0 %v774_v34  ;;  %401 = vmatpush1.bf16.msra.mxu1 %v775_v36  ;;  %v91_v36 = vsub.s32 4, %v1029_v53 }
  0x22   :  { %376 = vmatmul.mubr.bf16.vlgmr.msra.gmra.mxu0 %v22_v35 }
  0x23   :  { %430 = vmatpush1.bf16.msra.mxu0 %v772_v37  ;;  %461 = vmatprep.mubr.bf16.mxu0 %v845_v1  ;;  %v88_v1 = vrot.slane %v1035_v55, %v87_v59 }
  0x24   :  { %431 = vmatprep.subr.bf16.mxu0 %v778_v38  ;;  %419 = vmatmul.mubr.bf16.vlgmr.msra.gmra.mxu1 %v22_v35 }
  0x27   :  { %432 = vmatpush1.bf16.msra.mxu0 %v776_v39  ;;  %v95_v39 = vsub.s32 5, %v1029_v53 }
  0x28   :  { %433 = vmatprep.subr.bf16.mxu0 %v781_v40 }
  0x2b   :  { %434 = vmatpush1.bf16.msra.mxu0 %v779_v41  ;;  %v92_v41 = vrot.slane %v1035_v55, %v91_v36 }
  0x2c   :  { %435 = vmatprep.subr.bf16.mxu0 %v784_v42  ;;  %v96_v42 = vrot.slane %v1035_v55, %v95_v39  ;;  %v591_v39 = vld [vmem:[%s1109_s3 + $0x28] sm:$0xff] }
  0x2f   :  { %436 = vmatpush1.bf16.msra.mxu0 %v782_v43 }
  0x30   :  { %437 = vmatprep.subr.bf16.mxu0 %v787_v44 }
  0x33   :  { %438 = vmatpush1.bf16.msra.mxu0 %v785_v45 }
  0x34   :  { %439 = vmatprep.subr.bf16.mxu0 %v790_v46 }
  0x37   :  { %440 = vmatpush1.bf16.msra.mxu0 %v788_v47 }
  0x38   :  { %441 = vmatprep.subr.bf16.mxu0 %v793_v48 }
  0x3b   :  { %442 = vmatpush1.bf16.msra.mxu0 %v791_v49 }
  0x3c   :  { %443 = vmatprep.subr.bf16.mxu0 %v796_v50 }
  0x3f   :  { %444 = vmatpush1.bf16.msra.mxu0 %v794_v51 }
  0x42   :  { %462 = vmatmul.mubr.bf16.vlgmr.msra.gmra.mxu0 %v22_v35 }
  0xe2   :  { %v377_v61 = vpop.f32.mrf.mxu0 }
  0xe3   :  { %v378_v63 = vadd.f32 %v377_v61, %v76_v58 }
  0xe4   :  { %v379_v0 = vpop.f32.mrf.mxu0  ;;  %v420_v4 = vpop.f32.mrf.mxu1 }
  0xe5   :  { %v700_v2 = vmul.f32 -1.442695, %v378_v63  ;;  %v380_v3 = vadd.f32 %v379_v0, %v80_v60  ;;  %v421_v6 = vadd.f32 %v420_v4, %v84_v62  ;;  %v586_v4 = vld [vmem:[%s1109_s3] sm:$0xff] }
  0xe6   :  { %v381_v5 = vpop.f32.mrf.mxu0  ;;  %v422_v9 = vpop.f32.mrf.mxu1 }
  0xe7   :  { %797 = vpow2.f32 %v700_v2  ;;  %v701_v7 = vmul.f32 -1.442695, %v380_v3  ;;  %v382_v8 = vadd.f32 %v381_v5, %v76_v58  ;;  %v702_v10 = vmul.f32 -1.442695, %v421_v6  ;;  %v587_v5 = vld [vmem:[%s1109_s3 + $0x8] sm:$0xff] }
  0xe8   :  { %v383_v11 = vpop.f32.mrf.mxu0  ;;  %v423_v12 = vadd.f32 %v422_v9, %v88_v1  ;;  %v424_v15 = vpop.f32.mrf.mxu1  ;;  %v588_v9 = vld [vmem:[%s1109_s3 + $0x10] sm:$0xff] }
  0xe9   :  { %799 = vpow2.f32 %v701_v7  ;;  %v706_v13 = vmul.f32 -1.442695, %v382_v8  ;;  %v384_v14 = vadd.f32 %v383_v11, %v80_v60  ;;  %v425_v17 = vadd.f32 %v424_v15, %v84_v62  ;;  %v592_v15 = vld [vmem:[%s1109_s3 + $0x30] sm:$0xff] }
  0xea   :  { %801 = vpow2.f32 %v702_v10  ;;  %v703_v16 = vmul.f32 -1.442695, %v423_v12  ;;  %v426_v19 = vpop.f32.mrf.mxu1  ;;  %v593_v12 = vld [vmem:[%s1109_s3 + $0x38] sm:$0xff] }
  0xeb   :  { %803 = vpow2.f32 %v706_v13  ;;  %v707_v18 = vmul.f32 -1.442695, %v384_v14  ;;  %v708_v20 = vmul.f32 -1.442695, %v425_v17  ;;  %v427_v21 = vadd.f32 %v426_v19, %v88_v1 }
  0xec   :  { %805 = vpow2.f32 %v703_v16 }
  0xed   :  { %807 = vpow2.f32 %v707_v18  ;;  %v709_v22 = vmul.f32 -1.442695, %v427_v21 }
  0xee   :  { %809 = vpow2.f32 %v708_v20 }
  0xef   :  { %811 = vpow2.f32 %v709_v22  ;;  %v594_v22 = vld [vmem:[%s1109_s3 + $0x40] sm:$0xff] }
  0xf4   :  { %v798_v23 = vpop.eup %797 }
  0xf5   :  { %v508_v24 = vadd.f32 1.0, %v798_v23  ;;  %v589_v23 = vld [vmem:[%s1109_s3 + $0x18] sm:$0xff] }
  0xf6   :  { %v800_v25 = vpop.eup %799 }
  0xf7   :  { %v802_v26 = vpop.eup %801  ;;  %813 = vrcp.f32 %v508_v24  ;;  %v509_v27 = vadd.f32 1.0, %v800_v25 }
  0xf8   :  { %v804_v28 = vpop.eup %803  ;;  %v510_v29 = vadd.f32 1.0, %v802_v26 }
  0xf9   :  { %v806_v30 = vpop.eup %805  ;;  %815 = vrcp.f32 %v509_v27  ;;  %v514_v31 = vadd.f32 1.0, %v804_v28 }
  0xfa   :  { %v808_v32 = vpop.eup %807  ;;  %817 = vrcp.f32 %v510_v29  ;;  %v511_v33 = vadd.f32 1.0, %v806_v30  ;;  %v595_v30 = vld [vmem:[%s1109_s3 + $0x48] sm:$0xff] }
  0xfb   :  { %v810_v34 = vpop.eup %809  ;;  %819 = vrcp.f32 %v514_v31  ;;  %v515_v35 = vadd.f32 1.0, %v808_v32  ;;  %v590_v32 = vld [vmem:[%s1109_s3 + $0x20] sm:$0xff] }
  0xfc   :  { %821 = vrcp.f32 %v511_v33  ;;  %v516_v37 = vadd.f32 1.0, %v810_v34  ;;  %v812_v38 = vpop.eup %811 }
  0xfd   :  { %823 = vrcp.f32 %v515_v35  ;;  %v517_v40 = vadd.f32 1.0, %v812_v38 }
  0xfe   :  { %825 = vrcp.f32 %v516_v37 }
  0xff   :  { %827 = vrcp.f32 %v517_v40 }
 0x102   :  { %v463_v43 = vpop.f32.mrf.mxu0 }
 0x103   :  { %v464_v44 = vadd.f32 %v463_v43, %v92_v41 }
 0x104   :  { %v814_v45 = vpop.eup %813  ;;  %v465_v46 = vpop.f32.mrf.mxu0 }
 0x105   :  { %v704_v47 = vmul.f32 -1.442695, %v464_v44  ;;  %v466_v48 = vadd.f32 %v465_v46, %v96_v42  ;;  %v598_v10 = vsub.f32 %v814_v45, %v586_v4 }
 0x106   :  { %v816_v49 = vpop.eup %815  ;;  %v467_v50 = vpop.f32.mrf.mxu0 }
 0x107   :  { %v818_v51 = vpop.eup %817  ;;  %v718_v52 = vpack.c.bf16 %v816_v49, %v814_v45  ;;  %829 = vpow2.f32 %v704_v47  ;;  %v705_v54 = vmul.f32 -1.442695, %v466_v48  ;;  %v468_v53 = vadd.f32 %v467_v50, %v92_v41  ;;  %v597_v50 = vld [vmem:[%s1109_s3 + $0x58] sm:$0xff] }
 0x108   :  { %v820_v56 = vpop.eup %819  ;;  %v469_v57 = vpop.f32.mrf.mxu0  ;;  %v599_v11 = vsub.f32 %v816_v49, %v587_v5  ;;  %v600_v17 = vsub.f32 %v818_v51, %v588_v9  ;;  %v610_v20 = vmul.f32 %v598_v10, %v598_v10 }
 0x109   :  { %v822_v58 = vpop.eup %821  ;;  %580 = vst [vmem:[%s1108_s4] sm:$0xff] %v718_v52  ;;  %831 = vpow2.f32 %v705_v54  ;;  %v710_v55 = vmul.f32 -1.442695, %v468_v53  ;;  %v470_v59 = vadd.f32 %v469_v57, %v96_v42  ;;  %v604_v24 = vsub.f32 %v820_v56, %v592_v15  ;;  %v596_v42 = vld [vmem:[%s1109_s3 + $0x50] sm:$0xff] }
 0x10a   :  { %v824_v60 = vpop.eup %823  ;;  %v719_v61 = vpack.c.bf16 %v822_v58, %v818_v51  ;;  %v611_v21 = vmul.f32 %v599_v11, %v599_v11  ;;  %v601_v27 = vsub.f32 %v822_v58, %v589_v23  ;;  %v612_v28 = vmul.f32 %v600_v17, %v600_v17 }
 0x10b   :  { %v721_v62 = vpack.c.bf16 %v824_v60, %v820_v56  ;;  %833 = vpow2.f32 %v710_v55  ;;  %v711_v63 = vmul.f32 -1.442695, %v470_v59  ;;  %v826_v0 = vpop.eup %825  ;;  %v605_v18 = vsub.f32 %v824_v60, %v593_v12 }
 0x10c   :  { %581 = vst [vmem:[%s1108_s4 + $0x8] sm:$0xff] %v719_v61  ;;  %v828_v1 = vpop.eup %827  ;;  %v606_v25 = vsub.f32 %v826_v0, %v594_v22  ;;  %v622_v29 = vadd.f32 %v611_v21, %v610_v20  ;;  %v616_v31 = vmul.f32 %v604_v24, %v604_v24  ;;  %v613_v36 = vmul.f32 %v601_v27, %v601_v27 }
 0x10d   :  { %583 = vst [vmem:[%s1108_s4 + $0x18] sm:$0xff] %v721_v62  ;;  %835 = vpow2.f32 %v711_v63  ;;  %v722_v2 = vpack.c.bf16 %v828_v1, %v826_v0  ;;  %v617_v26 = vmul.f32 %v605_v18, %v605_v18  ;;  %v607_v33 = vsub.f32 %v828_v1, %v595_v30 }
 0x10e   :  { %v618_v34 = vmul.f32 %v606_v25, %v606_v25  ;;  %v623_v37 = vadd.f32 %v622_v29, %v612_v28 }
 0x10f   :  { %584 = vst [vmem:[%s1108_s4 + $0x20] sm:$0xff] %v722_v2  ;;  %v629_v35 = vadd.f32 %v617_v26, %v616_v31  ;;  %v619_v43 = vmul.f32 %v607_v33, %v607_v33 }
 0x110   :  { %v624_v48 = vadd.f32 %v623_v37, %v613_v36 }
 0x111   :  { %v630_v44 = vadd.f32 %v629_v35, %v618_v34 }
 0x113   :  { %v631_v56 = vadd.f32 %v630_v44, %v619_v43 }
 0x114   :  { %v830_v3 = vpop.eup %829 }
 0x115   :  { %v512_v6 = vadd.f32 1.0, %v830_v3 }
 0x116   :  { %v832_v7 = vpop.eup %831 }
 0x117   :  { %837 = vrcp.f32 %v512_v6  ;;  %v513_v8 = vadd.f32 1.0, %v832_v7 }
 0x118   :  { %v834_v13 = vpop.eup %833 }
 0x119   :  { %839 = vrcp.f32 %v513_v8  ;;  %v518_v14 = vadd.f32 1.0, %v834_v13 }
 0x11a   :  { %v836_v16 = vpop.eup %835 }
 0x11b   :  { %841 = vrcp.f32 %v518_v14  ;;  %v519_v19 = vadd.f32 1.0, %v836_v16 }
 0x11d   :  { %843 = vrcp.f32 %v519_v19 }
 0x124   :  { %v838_v38 = vpop.eup %837 }
 0x125   :  { %v602_v40 = vsub.f32 %v838_v38, %v590_v32 }
 0x126   :  { %v840_v41 = vpop.eup %839 }
 0x127   :  { %v720_v45 = vpack.c.bf16 %v840_v41, %v838_v38  ;;  %v603_v46 = vsub.f32 %v840_v41, %v591_v39  ;;  %v614_v47 = vmul.f32 %v602_v40, %v602_v40 }
 0x128   :  { %v842_v49 = vpop.eup %841 }
 0x129   :  { %582 = vst [vmem:[%s1108_s4 + $0x10] sm:$0xff] %v720_v45  ;;  %v615_v51 = vmul.f32 %v603_v46, %v603_v46  ;;  %v625_v52 = vadd.f32 %v624_v48, %v614_v47  ;;  %v608_v54 = vsub.f32 %v842_v49, %v596_v42 }
 0x12a   :  { %v844_v53 = vpop.eup %843 }
 0x12b   :  { %v723_v57 = vpack.c.bf16 %v844_v53, %v842_v49  ;;  %v626_v58 = vadd.f32 %v625_v52, %v615_v51  ;;  %v609_v55 = vsub.f32 %v844_v53, %v597_v50  ;;  %v620_v59 = vmul.f32 %v608_v54, %v608_v54 }
 0x12d   :  { %585 = vst [vmem:[%s1108_s4 + $0x28] sm:$0xff] %v723_v57  ;;  %627 = vadd.xlane.f32.xlu0 %v626_v58  ;;  %v621_v60 = vmul.f32 %v609_v55, %v609_v55  ;;  %v632_v61 = vadd.f32 %v631_v56, %v620_v59 }
 0x12f   :  { %v633_v62 = vadd.f32 %v632_v61, %v621_v60 }
 0x131   :  { %634 = vadd.xlane.f32.xlu0 %v633_v62 }
 0x1b6   :  { %v628_v63 = vpop.xlane.xlu0 %627 }
 0x1ba   :  { %v635_v0 = vpop.xlane.xlu0 %634 }
 0x1bb   :  { %v636_v1 = vadd.f32 %v635_v0, %v628_v63 }
 0x1bd   :  { %v637_v2 = vrot.slane %v636_v1, 4 }
 0x1bf   :  { %v638_v3 = vadd.f32 %v637_v2, %v636_v1 }
 0x1c1   :  { %v639_v4 = vrot.slane %v638_v3, 2 }
 0x1c3   :  { %v640_v5 = vadd.f32 %v639_v4, %v638_v3 }
 0x1c5   :  { %v641_v6 = vrot.slane %v640_v5, 1 }
 0x1c7   :  { %v642_v7 = vadd.f32 %v641_v6, %v640_v5 }
 0x1c9   :  { %643 = vst [vmem:[%s1110_s5] sm:$0xff] %v642_v7 }

// kernel: worldmodel_forward.5
= control target key start
LH: loop header
LB: loop body
LE: loop exit
PB: predicated region body
PF: predicated region fallthrough
CT: control target
= control target key end

     0   :  { %s1166_s12 = smov 0   ;;  %s1168_s13 = smov 0   ;;  %s1422_s0 = inlined_call_operand.vmem [shape: f32[2,8,128], index: 0, kind: input, shape index: {}]   ;;  %s1423_s1 = inlined_call_operand.vmem [shape: f32[2,8,1], index: 1, kind: input, shape index: {}]   ;;  %s1424_s2 = inlined_call_operand.vmem [shape: bf16[128,128], index: 2, kind: input, shape index: {}]   ;;  %s1425_s3 = inlined_call_operand.vmem [shape: f32[2,8,128], index: 3, kind: output, shape index: {}]  }
   0x1   :  { %s1170_s14 = smov 0  }
   0x2 LB: > { %s25_s15 = sadd.s32 1, %s1137_s13  ;;  %p820_p0 = scmp.ge.s32.totalorder %s1141_s14, 1  ;;  %s1141_s14 = sphi %s1170_s14, %s13_s14   ;;  %s1137_s13 = sphi %s1168_s13, %s1427_s13   ;;  %s1133_s12 = sphi %s1166_s12, %s1426_s12  }
   0x3   : > { %p27_p1 = scmp.ge.s32.totalorder %s25_s15, 2  ;;  %p169_p2 = scmp.lt.s32.totalorder %s1141_s14, 3 }
   0x5   : > { %s1429_s15 = smov (%p27_p1, %s25_s15), 0  ;;  %p170_p3 = pnand %p820_p0, %p169_p2 }
   0x6   : > { %p204_p4 = scmp.lt.s32.totalorder (!%p170_p3), %s1133_s12, 1 }
   0x7   : > { %173 = sbr.rel (%p170_p3) target bundleno = 1902 (0x76e), region = 32 }
   0xc   : > { %v1187_v0 = vld [vmem:[%s1424_s2 + $0x38] sm:$0xff]   ;;  %v1143_v1 = vmov 0   ;;  %v1144_v2 = vmov 0.0   ;;  %s1431_s12 = smov (!%p204_p4, %s1133_s12), 1  ;;  %v1195_v3 = vld [vmem:[%s1424_s2 + $0x30] sm:$0xff]   ;;  %v1214_v5 = vld [vmem:[%s1424_s2 + $0x28] sm:$0xff]  }
   0xd   : > { %1093 = vset.pattern.permute.xlu0 %v1143_v1  ;;  %906 = vmatprep.subr.bf16.mxu0 %v1144_v2  ;;  %230 = vst [vmem:[#allocation2] sm:$0x1] %v1144_v2  ;;  %s1200_s20 = sshll.u32 %s1431_s12, 3  ;;  %vm1145_vm0 = vmmov 0   ;;  %v1228_v7 = vld [vmem:[%s1424_s2 + $0x20] sm:$0xff]   ;;  %v1238_v9 = vld [vmem:[%s1424_s2 + $0x18] sm:$0xff]  }
   0xe   : > { %907 = vmatpush3.bf16.msra.mxu0 %v1187_v0  ;;  %926 = vmatprep.subr.bf16.mxu1 %v1144_v2  ;;  %s1207_s23 = scalar_lea.vmem %s1423_s1, %s1200_s20  ;;  %v1248_v11 = vld [vmem:[%s1424_s2 + $0x10] sm:$0xff]   ;;  %v1257_v12 = vld [vmem:[%s1424_s2 + $0x8] sm:$0xff]   ;;  %v1266_v13 = vld [vmem:[%s1424_s2] sm:$0xff]   ;;  %s1301_s11 = scalar_lea.vmem %s1422_s0, %s1200_s20 }
   0xf   : > { %908 = vmatprep.subr.bf16.mxu0 %v1144_v2  ;;  %927 = vmatpush3.bf16.msra.mxu1 %v1187_v0  ;;  %v248_v4 = vld [vmem:[%s1207_s23] sm:$0x1]  ;;  %v350_v6 = vld [vmem:[%s1207_s23 + $0x1] sm:$0x1]  ;;  %v512_v8 = vld [vmem:[%s1207_s23 + $0x4] sm:$0x1]  ;;  %s1308_s17 = scalar_lea.vmem %s1425_s3, %s1200_s20 }
  0x10   : > { %928 = vmatprep.subr.bf16.mxu1 %v1144_v2  ;;  %1094 = vset.pattern.permute.xlu1 %v1143_v1  ;;  %v620_v10 = vld [vmem:[%s1207_s23 + $0x6] sm:$0x1]  ;;  %v404_v18 = vld [vmem:[%s1207_s23 + $0x2] sm:$0x1]  ;;  %v458_v19 = vld [vmem:[%s1207_s23 + $0x3] sm:$0x1] }
  0x11   : > { %922 = vmatprep.mubr.msk.bf16.mxu0 %vm1145_vm0, %v1144_v2  ;;  %251 = vperm.xlu0 %1093, %v248_v4   ;;  %v566_v20 = vld [vmem:[%s1207_s23 + $0x5] sm:$0x1]  ;;  %v674_v21 = vld [vmem:[%s1207_s23 + $0x7] sm:$0x1]  ;;  %v255_v22 = vld [vmem:[%s1301_s11] sm:$0x1] }
  0x12   : > { %909 = vmatpush3.bf16.msra.mxu0 %v1195_v3  ;;  %942 = vmatprep.mubr.msk.bf16.mxu1 %vm1145_vm0, %v1144_v2  ;;  %v357_v33 = vld [vmem:[%s1301_s11 + $0x1] sm:$0x1]  ;;  %v411_v44 = vld [vmem:[%s1301_s11 + $0x2] sm:$0x1]  ;;  %v465_v55 = vld [vmem:[%s1301_s11 + $0x3] sm:$0x1] }
  0x13   : > { %910 = vmatprep.subr.bf16.mxu0 %v1144_v2  ;;  %929 = vmatpush3.bf16.msra.mxu1 %v1195_v3 }
  0x14   : > { %930 = vmatprep.subr.bf16.mxu1 %v1144_v2  ;;  %v247_v14 = vld [vmem:[#allocation2] sm:$0x1]  ;;  %407 = vperm.xlu1 %1094, %v404_v18  }
  0x15   : > { %353 = vperm.xlu0 %1093, %v350_v6   ;;  %v519_v6 = vld [vmem:[%s1301_s11 + $0x4] sm:$0x1] }
  0x16   : > { %911 = vmatpush3.bf16.msra.mxu0 %v1214_v5 }
  0x17   : > { %912 = vmatprep.subr.bf16.mxu0 %v1144_v2  ;;  %931 = vmatpush3.bf16.msra.mxu1 %v1214_v5 }
  0x18   : > { %932 = vmatprep.subr.bf16.mxu1 %v1144_v2  ;;  %461 = vperm.xlu1 %1094, %v458_v19  }
  0x19   : > { %515 = vperm.xlu0 %1093, %v512_v8  }
  0x1a   : > { %913 = vmatpush3.bf16.msra.mxu0 %v1228_v7 }
  0x1b   : > { %914 = vmatprep.subr.bf16.mxu0 %v1144_v2  ;;  %933 = vmatpush3.bf16.msra.mxu1 %v1228_v7 }
  0x1c   : > { %934 = vmatprep.subr.bf16.mxu1 %v1144_v2  ;;  %569 = vperm.xlu1 %1094, %v566_v20  }
  0x1d   : > { %623 = vperm.xlu0 %1093, %v620_v10  }
  0x1e   : > { %915 = vmatpush3.bf16.msra.mxu0 %v1238_v9 }
  0x1f   : > { %916 = vmatprep.subr.bf16.mxu0 %v1144_v2  ;;  %935 = vmatpush3.bf16.msra.mxu1 %v1238_v9 }
  0x20   : > { %936 = vmatprep.subr.bf16.mxu1 %v1144_v2  ;;  %677 = vperm.xlu1 %1094, %v674_v21  }
  0x22   : > { %917 = vmatpush3.bf16.msra.mxu0 %v1248_v11 }
  0x23   : > { %918 = vmatprep.subr.bf16.mxu0 %v1144_v2  ;;  %937 = vmatpush3.bf16.msra.mxu1 %v1248_v11 }
  0x24   : > { %938 = vmatprep.subr.bf16.mxu1 %v1144_v2 }
  0x26   : > { %919 = vmatpush3.bf16.msra.mxu0 %v1257_v12 }
  0x27   : > { %920 = vmatprep.subr.bf16.mxu0 %v1144_v2  ;;  %939 = vmatpush3.bf16.msra.mxu1 %v1257_v12 }
  0x28   : > { %940 = vmatprep.subr.bf16.mxu1 %v1144_v2 }
  0x2a   : > { %921 = vmatpush3.bf16.msra.mxu0 %v1266_v13 }
  0x2b   : > { %946 = vmatprep.subr.bf16.mxu0 %v1144_v2  ;;  %941 = vmatpush3.bf16.msra.mxu1 %v1266_v13 }
  0x2c   : > { %966 = vmatprep.subr.bf16.mxu1 %v1144_v2 }
  0x8c   : > { %v252_v15 = vpop.permute.xlu0 %251 }
  0x8d   : > { %v254_v16 = vmul.f32 %v252_v15, %v247_v14 }
  0x8f   : > { %v256_v17 = vpack.c.bf16 %v254_v16, %v254_v16  ;;  %v408_v40 = vpop.permute.xlu1 %407 }
  0x90   : > { %v354_v29 = vpop.permute.xlu0 %353 }
  0x91   : > { %923 = vmatmul.mubr.bf16.vlgmr.msra.gmra.mxu0 %v256_v17 }
  0x92   : > { %947 = vmatpush3.bf16.msra.mxu0 %v1187_v0  ;;  %962 = vmatprep.mubr.msk.bf16.mxu0 %vm1145_vm0, %v1144_v2 }
  0x93   : > { %948 = vmatprep.subr.bf16.mxu0 %v1144_v2  ;;  %v462_v51 = vpop.permute.xlu1 %461 }
  0x94   : > { %v516_v62 = vpop.permute.xlu0 %515 }
  0x96   : > { %949 = vmatpush3.bf16.msra.mxu0 %v1195_v3 }
  0x97   : > { %950 = vmatprep.subr.bf16.mxu0 %v1144_v2  ;;  %v570_v18 = vpop.permute.xlu1 %569 }
  0x9a   : > { %951 = vmatpush3.bf16.msra.mxu0 %v1214_v5 }
  0x9b   : > { %952 = vmatprep.subr.bf16.mxu0 %v1144_v2 }
  0x9e   : > { %953 = vmatpush3.bf16.msra.mxu0 %v1228_v7 }
  0x9f   : > { %954 = vmatprep.subr.bf16.mxu0 %v1144_v2 }
  0xa2   : > { %955 = vmatpush3.bf16.msra.mxu0 %v1238_v9 }
  0xa3   : > { %956 = vmatprep.subr.bf16.mxu0 %v1144_v2 }
  0xa6   : > { %957 = vmatpush3.bf16.msra.mxu0 %v1248_v11 }
  0xa7   : > { %958 = vmatprep.subr.bf16.mxu0 %v1144_v2 }
  0xaa   : > { %959 = vmatpush3.bf16.msra.mxu0 %v1257_v12 }
  0xab   : > { %960 = vmatprep.subr.bf16.mxu0 %v1144_v2 }
  0xae   : > { %961 = vmatpush3.bf16.msra.mxu0 %v1266_v13 }
  0xaf   : > { %986 = vmatprep.subr.bf16.mxu0 %v1144_v2 }
 0x151   : > { %v339_v23 = vpop.f32.mrf.mxu0 }
 0x152   : > { %v345_v24 = vadd.f32 %v339_v23, %v255_v22 }
 0x153   : > { %v924_v25 = vpop.f32.mrf.mxu0 }
 0x154   : > { %1103 = vtanh.f32 %v345_v24 }
 0x155   : > { %v342_v26 = vpop.f32.mrf.mxu0 }
 0x157   : > { %v925_v27 = vpop.f32.mrf.mxu0 }
 0x161   : > { %v1104_v28 = vpop.eup %1103 }
 0x162   : > { %347 = vst [vmem:[#allocation2] sm:$0x1] %v1104_v28  ;;  %348 = vst [vmem:[%s1308_s17] sm:$0x1] %v1104_v28 }
 0x169   : > { %v349_v30 = vld [vmem:[#allocation2] sm:$0x1] }
 0x16a   : > { %v356_v31 = vmul.f32 %v354_v29, %v349_v30 }
 0x16c   : > { %v358_v32 = vpack.c.bf16 %v356_v31, %v356_v31  ;;  %v678_v31 = vpop.permute.xlu1 %677 }
 0x16e   : > { %943 = vmatmul.mubr.bf16.vlgmr.msra.gmra.mxu1 %v358_v32 }
 0x16f   : > { %967 = vmatpush3.bf16.msra.mxu1 %v1187_v0  ;;  %982 = vmatprep.mubr.msk.bf16.mxu1 %vm1145_vm0, %v1144_v2 }
 0x170   : > { %968 = vmatprep.subr.bf16.mxu1 %v1144_v2 }
 0x173   : > { %969 = vmatpush3.bf16.msra.mxu1 %v1195_v3 }
 0x174   : > { %970 = vmatprep.subr.bf16.mxu1 %v1144_v2 }
 0x177   : > { %971 = vmatpush3.bf16.msra.mxu1 %v1214_v5 }
 0x178   : > { %972 = vmatprep.subr.bf16.mxu1 %v1144_v2 }
 0x17b   : > { %973 = vmatpush3.bf16.msra.mxu1 %v1228_v7 }
 0x17c   : > { %974 = vmatprep.subr.bf16.mxu1 %v1144_v2 }
 0x17f   : > { %975 = vmatpush3.bf16.msra.mxu1 %v1238_v9 }
 0x180   : > { %976 = vmatprep.subr.bf16.mxu1 %v1144_v2 }
 0x183   : > { %977 = vmatpush3.bf16.msra.mxu1 %v1248_v11 }
 0x184   : > { %978 = vmatprep.subr.bf16.mxu1 %v1144_v2 }
 0x187   : > { %979 = vmatpush3.bf16.msra.mxu1 %v1257_v12 }
 0x188   : > { %980 = vmatprep.subr.bf16.mxu1 %v1144_v2 }
 0x18b   : > { %981 = vmatpush3.bf16.msra.mxu1 %v1266_v13 }
 0x18c   : > { %1006 = vmatprep.subr.bf16.mxu1 %v1144_v2 }
 0x22e   : > { %v393_v34 = vpop.f32.mrf.mxu1 }
 0x22f   : > { %v399_v35 = vadd.f32 %v393_v34, %v357_v33 }
 0x230   : > { %v944_v36 = vpop.f32.mrf.mxu1 }
 0x231   : > { %1105 = vtanh.f32 %v399_v35  ;;  %v681_v35 = vld [vmem:[%s1301_s11 + $0x7] sm:$0x1] }
 0x232   : > { %v396_v37 = vpop.f32.mrf.mxu1 }
 0x234   : > { %v945_v38 = vpop.f32.mrf.mxu1 }
 0x23e   : > { %v1106_v39 = vpop.eup %1105 }
 0x23f   : > { %402 = vst [vmem:[%s1308_s17 + $0x1] sm:$0x1] %v1106_v39  ;;  %401 = vst [vmem:[#allocation2] sm:$0x1] %v1106_v39 }
 0x246   : > { %v403_v41 = vld [vmem:[#allocation2] sm:$0x1] }
 0x247   : > { %v410_v42 = vmul.f32 %v408_v40, %v403_v41 }
 0x249   : > { %v412_v43 = vpack.c.bf16 %v410_v42, %v410_v42 }
 0x24b   : > { %963 = vmatmul.mubr.bf16.vlgmr.msra.gmra.mxu0 %v412_v43 }
 0x24c   : > { %987 = vmatpush3.bf16.msra.mxu0 %v1187_v0  ;;  %1002 = vmatprep.mubr.msk.bf16.mxu0 %vm1145_vm0, %v1144_v2 }
 0x24d   : > { %988 = vmatprep.subr.bf16.mxu0 %v1144_v2 }
 0x250   : > { %989 = vmatpush3.bf16.msra.mxu0 %v1195_v3 }
 0x251   : > { %990 = vmatprep.subr.bf16.mxu0 %v1144_v2 }
 0x254   : > { %991 = vmatpush3.bf16.msra.mxu0 %v1214_v5 }
 0x255   : > { %992 = vmatprep.subr.bf16.mxu0 %v1144_v2 }
 0x258   : > { %993 = vmatpush3.bf16.msra.mxu0 %v1228_v7 }
 0x259   : > { %994 = vmatprep.subr.bf16.mxu0 %v1144_v2 }
 0x25c   : > { %995 = vmatpush3.bf16.msra.mxu0 %v1238_v9 }
 0x25d   : > { %996 = vmatprep.subr.bf16.mxu0 %v1144_v2 }
 0x260   : > { %997 = vmatpush3.bf16.msra.mxu0 %v1248_v11 }
 0x261   : > { %998 = vmatprep.subr.bf16.mxu0 %v1144_v2 }
 0x264   : > { %999 = vmatpush3.bf16.msra.mxu0 %v1257_v12 }
 0x265   : > { %1000 = vmatprep.subr.bf16.mxu0 %v1144_v2 }
 0x268   : > { %1001 = vmatpush3.bf16.msra.mxu0 %v1266_v13 }
 0x269   : > { %1026 = vmatprep.subr.bf16.mxu0 %v1144_v2 }
 0x30b   : > { %v447_v45 = vpop.f32.mrf.mxu0 }
 0x30c   : > { %v453_v46 = vadd.f32 %v447_v45, %v411_v44 }
 0x30d   : > { %v964_v47 = vpop.f32.mrf.mxu0 }
 0x30e   : > { %1107 = vtanh.f32 %v453_v46 }
 0x30f   : > { %v450_v48 = vpop.f32.mrf.mxu0 }
 0x311   : > { %v965_v49 = vpop.f32.mrf.mxu0 }
 0x31b   : > { %v1108_v50 = vpop.eup %1107 }
 0x31c   : > { %456 = vst [vmem:[%s1308_s17 + $0x2] sm:$0x1] %v1108_v50  ;;  %455 = vst [vmem:[#allocation2] sm:$0x1] %v1108_v50 }
 0x323   : > { %v457_v52 = vld [vmem:[#allocation2] sm:$0x1] }
 0x324   : > { %v464_v53 = vmul.f32 %v462_v51, %v457_v52 }
 0x326   : > { %v466_v54 = vpack.c.bf16 %v464_v53, %v464_v53 }
 0x328   : > { %983 = vmatmul.mubr.bf16.vlgmr.msra.gmra.mxu1 %v466_v54 }
 0x329   : > { %1007 = vmatpush3.bf16.msra.mxu1 %v1187_v0  ;;  %1022 = vmatprep.mubr.msk.bf16.mxu1 %vm1145_vm0, %v1144_v2 }
 0x32a   : > { %1008 = vmatprep.subr.bf16.mxu1 %v1144_v2 }
 0x32d   : > { %1009 = vmatpush3.bf16.msra.mxu1 %v1195_v3 }
 0x32e   : > { %1010 = vmatprep.subr.bf16.mxu1 %v1144_v2 }
 0x331   : > { %1011 = vmatpush3.bf16.msra.mxu1 %v1214_v5 }
 0x332   : > { %1012 = vmatprep.subr.bf16.mxu1 %v1144_v2 }
 0x335   : > { %1013 = vmatpush3.bf16.msra.mxu1 %v1228_v7 }
 0x336   : > { %1014 = vmatprep.subr.bf16.mxu1 %v1144_v2 }
 0x339   : > { %1015 = vmatpush3.bf16.msra.mxu1 %v1238_v9 }
 0x33a   : > { %1016 = vmatprep.subr.bf16.mxu1 %v1144_v2 }
 0x33d   : > { %1017 = vmatpush3.bf16.msra.mxu1 %v1248_v11 }
 0x33e   : > { %1018 = vmatprep.subr.bf16.mxu1 %v1144_v2 }
 0x341   : > { %1019 = vmatpush3.bf16.msra.mxu1 %v1257_v12 }
 0x342   : > { %1020 = vmatprep.subr.bf16.mxu1 %v1144_v2 }
 0x345   : > { %1021 = vmatpush3.bf16.msra.mxu1 %v1266_v13 }
 0x346   : > { %1046 = vmatprep.subr.bf16.mxu1 %v1144_v2 }
 0x3e8   : > { %v501_v56 = vpop.f32.mrf.mxu1 }
 0x3e9   : > { %v507_v57 = vadd.f32 %v501_v56, %v465_v55 }
 0x3ea   : > { %v984_v58 = vpop.f32.mrf.mxu1 }
 0x3eb   : > { %1109 = vtanh.f32 %v507_v57 }
 0x3ec   : > { %v504_v59 = vpop.f32.mrf.mxu1 }
 0x3ee   : > { %v985_v60 = vpop.f32.mrf.mxu1 }
 0x3f8   : > { %v1110_v61 = vpop.eup %1109 }
 0x3f9   : > { %510 = vst [vmem:[%s1308_s17 + $0x3] sm:$0x1] %v1110_v61  ;;  %509 = vst [vmem:[#allocation2] sm:$0x1] %v1110_v61 }
 0x400   : > { %v511_v63 = vld [vmem:[#allocation2] sm:$0x1] }
 0x401   : > { %v518_v1 = vmul.f32 %v516_v62, %v511_v63 }
 0x403   : > { %v520_v4 = vpack.c.bf16 %v518_v1, %v518_v1 }
 0x405   : > { %1003 = vmatmul.mubr.bf16.vlgmr.msra.gmra.mxu0 %v520_v4 }
 0x406   : > { %1027 = vmatpush3.bf16.msra.mxu0 %v1187_v0  ;;  %1042 = vmatprep.mubr.msk.bf16.mxu0 %vm1145_vm0, %v1144_v2 }
 0x407   : > { %1028 = vmatprep.subr.bf16.mxu0 %v1144_v2 }
 0x40a   : > { %1029 = vmatpush3.bf16.msra.mxu0 %v1195_v3 }
 0x40b   : > { %1030 = vmatprep.subr.bf16.mxu0 %v1144_v2 }
 0x40e   : > { %1031 = vmatpush3.bf16.msra.mxu0 %v1214_v5 }
 0x40f   : > { %1032 = vmatprep.subr.bf16.mxu0 %v1144_v2 }
 0x412   : > { %1033 = vmatpush3.bf16.msra.mxu0 %v1228_v7 }
 0x413   : > { %1034 = vmatprep.subr.bf16.mxu0 %v1144_v2 }
 0x416   : > { %1035 = vmatpush3.bf16.msra.mxu0 %v1238_v9 }
 0x417   : > { %1036 = vmatprep.subr.bf16.mxu0 %v1144_v2 }
 0x41a   : > { %1037 = vmatpush3.bf16.msra.mxu0 %v1248_v11 }
 0x41b   : > { %1038 = vmatprep.subr.bf16.mxu0 %v1144_v2 }
 0x41e   : > { %1039 = vmatpush3.bf16.msra.mxu0 %v1257_v12 }
 0x41f   : > { %1040 = vmatprep.subr.bf16.mxu0 %v1144_v2 }
 0x422   : > { %1041 = vmatpush3.bf16.msra.mxu0 %v1266_v13 }
 0x4c5   : > { %v555_v8 = vpop.f32.mrf.mxu0 }
 0x4c6   : > { %v561_v10 = vadd.f32 %v555_v8, %v519_v6 }
 0x4c7   : > { %v1004_v14 = vpop.f32.mrf.mxu0 }
 0x4c8   : > { %1111 = vtanh.f32 %v561_v10 }
 0x4c9   : > { %v558_v15 = vpop.f32.mrf.mxu0 }
 0x4cb   : > { %v1005_v16 = vpop.f32.mrf.mxu0 }
 0x4d5   : > { %v1112_v17 = vpop.eup %1111 }
 0x4d6   : > { %564 = vst [vmem:[%s1308_s17 + $0x4] sm:$0x1] %v1112_v17  ;;  %563 = vst [vmem:[#allocation2] sm:$0x1] %v1112_v17 }
 0x4dd   : > { %v565_v19 = vld [vmem:[#allocation2] sm:$0x1] }
 0x4de   : > { %v572_v20 = vmul.f32 %v570_v18, %v565_v19 }
 0x4e0   : > { %v574_v21 = vpack.c.bf16 %v572_v20, %v572_v20 }
 0x4e2   : > { %1023 = vmatmul.mubr.bf16.vlgmr.msra.gmra.mxu1 %v574_v21 }
 0x4e3   : > { %1047 = vmatpush3.bf16.msra.mxu1 %v1187_v0  ;;  %1062 = vmatprep.mubr.msk.bf16.mxu1 %vm1145_vm0, %v1144_v2  ;;  %v573_v0 = vld [vmem:[%s1301_s11 + $0x5] sm:$0x1] }
 0x4e4   : > { %1048 = vmatprep.subr.bf16.mxu1 %v1144_v2 }
 0x4e7   : > { %1049 = vmatpush3.bf16.msra.mxu1 %v1195_v3 }
 0x4e8   : > { %1050 = vmatprep.subr.bf16.mxu1 %v1144_v2 }
 0x4eb   : > { %1051 = vmatpush3.bf16.msra.mxu1 %v1214_v5 }
 0x4ec   : > { %1052 = vmatprep.subr.bf16.mxu1 %v1144_v2 }
 0x4ef   : > { %1053 = vmatpush3.bf16.msra.mxu1 %v1228_v7 }
 0x4f0   : > { %1054 = vmatprep.subr.bf16.mxu1 %v1144_v2 }
 0x4f3   : > { %1055 = vmatpush3.bf16.msra.mxu1 %v1238_v9 }
 0x4f4   : > { %1056 = vmatprep.subr.bf16.mxu1 %v1144_v2 }
 0x4f7   : > { %1057 = vmatpush3.bf16.msra.mxu1 %v1248_v11  ;;  %v624_v11 = vpop.permute.xlu0 %623 }
 0x4f8   : > { %1058 = vmatprep.subr.bf16.mxu1 %v1144_v2 }
 0x4fb   : > { %1059 = vmatpush3.bf16.msra.mxu1 %v1257_v12 }
 0x4fc   : > { %1060 = vmatprep.subr.bf16.mxu1 %v1144_v2  ;;  %v627_v2 = vld [vmem:[%s1301_s11 + $0x6] sm:$0x1] }
 0x4ff   : > { %1061 = vmatpush3.bf16.msra.mxu1 %v1266_v13 }
 0x5a2   : > { %v609_v3 = vpop.f32.mrf.mxu1 }
 0x5a3   : > { %v615_v5 = vadd.f32 %v609_v3, %v573_v0 }
 0x5a4   : > { %v1024_v7 = vpop.f32.mrf.mxu1 }
 0x5a5   : > { %1113 = vtanh.f32 %v615_v5 }
 0x5a6   : > { %v612_v22 = vpop.f32.mrf.mxu1 }
 0x5a8   : > { %v1025_v9 = vpop.f32.mrf.mxu1 }
 0x5b2   : > { %v1114_v23 = vpop.eup %1113 }
 0x5b3   : > { %618 = vst [vmem:[%s1308_s17 + $0x5] sm:$0x1] %v1114_v23  ;;  %617 = vst [vmem:[#allocation2] sm:$0x1] %v1114_v23 }
 0x5ba   : > { %v619_v24 = vld [vmem:[#allocation2] sm:$0x1] }
 0x5bb   : > { %v626_v25 = vmul.f32 %v624_v11, %v619_v24 }
 0x5bd   : > { %v628_v12 = vpack.c.bf16 %v626_v25, %v626_v25 }
 0x5bf   : > { %1043 = vmatmul.mubr.bf16.vlgmr.msra.gmra.mxu0 %v628_v12 }
 0x67f   : > { %v663_v13 = vpop.f32.mrf.mxu0 }
 0x680   : > { %v669_v26 = vadd.f32 %v663_v13, %v627_v2 }
 0x681   : > { %v1044_v27 = vpop.f32.mrf.mxu0 }
 0x682   : > { %1115 = vtanh.f32 %v669_v26 }
 0x683   : > { %v666_v28 = vpop.f32.mrf.mxu0 }
 0x685   : > { %v1045_v29 = vpop.f32.mrf.mxu0 }
 0x68f   : > { %v1116_v30 = vpop.eup %1115 }
 0x690   : > { %672 = vst [vmem:[%s1308_s17 + $0x6] sm:$0x1] %v1116_v30  ;;  %671 = vst [vmem:[#allocation2] sm:$0x1] %v1116_v30 }
 0x697   : > { %v673_v32 = vld [vmem:[#allocation2] sm:$0x1] }
 0x698   : > { %v680_v33 = vmul.f32 %v678_v31, %v673_v32 }
 0x69a   : > { %v682_v34 = vpack.c.bf16 %v680_v33, %v680_v33 }
 0x69c   : > { %1063 = vmatmul.mubr.bf16.vlgmr.msra.gmra.mxu1 %v682_v34 }
 0x75c   : > { %v717_v36 = vpop.f32.mrf.mxu1 }
 0x75d   : > { %v723_v37 = vadd.f32 %v717_v36, %v681_v35 }
 0x75e   : > { %v1064_v38 = vpop.f32.mrf.mxu1 }
 0x75f   : > { %1117 = vtanh.f32 %v723_v37 }
 0x760   : > { %v720_v39 = vpop.f32.mrf.mxu1 }
 0x762   : > { %v1065_v40 = vpop.f32.mrf.mxu1 }
 0x76c   : > { %v1118_v41 = vpop.eup %1117 }
 0x76d   : > { %725 = vst [vmem:[#allocation2] sm:$0x1] %v1118_v41  ;;  %726 = vst [vmem:[%s1308_s17 + $0x7] sm:$0x1] %v1118_v41 }
 0x76e PF: > { %s13_s14 = sadd.s32 1, %s1141_s14   ;;  %s1426_s12 = smov %s1137_s13 }
 0x76f   : > { %p10_p5 = scmp.ge.s32.totalorder %s13_s14, 4   ;;  %s1427_s13 = smov %s1429_s15 }
 0x771   :  { %12 = sbr.rel (!%p10_p5) target bundleno = 2 (0x2), region = 69 }

// kernel: worldmodel_forward.4
= control target key start
LH: loop header
LB: loop body
LE: loop exit
PB: predicated region body
PF: predicated region fallthrough
CT: control target
= control target key end

     0   :  { %vm1047_vm0 = vmmov 0   ;;  %s1334_s1 = inlined_call_operand.vmem [shape: bf16[768,128], index: 1, kind: input, shape index: {}]   ;;  %s1335_s0 = inlined_call_operand.vmem [shape: f32[16,768], index: 0, kind: input, shape index: {}]   ;;  %s1336_s5 = inlined_call_operand.vmem [shape: bf16[128,128], index: 5, kind: input, shape index: {}]   ;;  %s1337_s3 = inlined_call_operand.vmem [shape: bf16[128,128], index: 3, kind: input, shape index: {}]   ;;  %s1338_s4 = inlined_call_operand.vmem [shape: f32[16,128], index: 4, kind: input, shape index: {}]   ;;  %s1339_s2 = inlined_call_operand.vmem [shape: f32[1,128], index: 2, kind: input, shape index: {}]   ;;  %s1340_s6 = inlined_call_operand.vmem [shape: f32[1,128], index: 6, kind: input, shape index: {}]   ;;  %s1341_s7 = inlined_call_operand.vmem [shape: f32[16,128], index: 7, kind: output, shape index: {}]  }
   0x1   :  { %v982_v0 = vld [vmem:[%s1334_s1 + $0x78] sm:$0xff]   ;;  %v986_v4 = vld [vmem:[%s1334_s1 + $0x70] sm:$0xff]   ;;  %v990_v8 = vld [vmem:[%s1334_s1 + $0x68] sm:$0xff]  }
   0x2   :  { %v983_v1 = vld [vmem:[%s1334_s1 + $0x38] sm:$0xff]   ;;  %856 = vmatprep.subr.bf16.mxu0 %v982_v0  ;;  %v987_v5 = vld [vmem:[%s1334_s1 + $0x30] sm:$0xff]   ;;  %v991_v9 = vld [vmem:[%s1334_s1 + $0x28] sm:$0xff]  }
   0x3   :  { %v984_v2 = vld [vmem:[%s1334_s1 + $0xf8] sm:$0xff]   ;;  %857 = vmatpush3.bf16.msra.mxu0 %v983_v1  ;;  %v988_v6 = vld [vmem:[%s1334_s1 + $0xf0] sm:$0xff]   ;;  %v992_v10 = vld [vmem:[%s1334_s1 + $0xe8] sm:$0xff]  }
   0x4   :  { %v985_v3 = vld [vmem:[%s1334_s1 + $0xb8] sm:$0xff]   ;;  %878 = vmatprep.subr.bf16.mxu1 %v984_v2  ;;  %858 = vmatprep.subr.bf16.mxu0 %v986_v4  ;;  %v989_v7 = vld [vmem:[%s1334_s1 + $0xb0] sm:$0xff]   ;;  %v993_v11 = vld [vmem:[%s1334_s1 + $0xa8] sm:$0xff]  }
   0x5   :  { %879 = vmatpush3.bf16.msra.mxu1 %v985_v3  ;;  %v994_v12 = vld [vmem:[%s1334_s1 + $0x60] sm:$0xff]   ;;  %v998_v16 = vld [vmem:[%s1334_s1 + $0x58] sm:$0xff]   ;;  %v1002_v20 = vld [vmem:[%s1334_s1 + $0x50] sm:$0xff]   ;;  %v1046_v3 = vmov 0.0  }
   0x6   :  { %880 = vmatprep.subr.bf16.mxu1 %v988_v6  ;;  %v995_v13 = vld [vmem:[%s1334_s1 + $0x20] sm:$0xff]   ;;  %v999_v17 = vld [vmem:[%s1334_s1 + $0x18] sm:$0xff]   ;;  %v1003_v21 = vld [vmem:[%s1334_s1 + $0x10] sm:$0xff]  }
   0x7   :  { %859 = vmatpush3.bf16.msra.mxu0 %v987_v5  ;;  %v996_v14 = vld [vmem:[%s1334_s1 + $0xe0] sm:$0xff]   ;;  %v1000_v18 = vld [vmem:[%s1334_s1 + $0xd8] sm:$0xff]   ;;  %v1004_v22 = vld [vmem:[%s1334_s1 + $0xd0] sm:$0xff]  }
   0x8   :  { %860 = vmatprep.subr.bf16.mxu0 %v990_v8  ;;  %v997_v15 = vld [vmem:[%s1334_s1 + $0xa0] sm:$0xff]   ;;  %v1001_v19 = vld [vmem:[%s1334_s1 + $0x98] sm:$0xff]   ;;  %v1005_v23 = vld [vmem:[%s1334_s1 + $0x90] sm:$0xff]  }
   0x9   :  { %881 = vmatpush3.bf16.msra.mxu1 %v989_v7  ;;  %v1006_v24 = vld [vmem:[%s1334_s1 + $0x48] sm:$0xff]   ;;  %v1010_v28 = vld [vmem:[%s1334_s1 + $0x40] sm:$0xff]   ;;  %v34_v32 = vld [vmem:[%s1335_s0 + $0x38] sm:$0xff] }
   0xa   :  { %882 = vmatprep.subr.bf16.mxu1 %v992_v10  ;;  %v1007_v25 = vld [vmem:[%s1334_s1 + $0x8] sm:$0xff]   ;;  %v1011_v29 = vld [vmem:[%s1334_s1] sm:$0xff]   ;;  %v33_v36 = vld [vmem:[%s1335_s0 + $0x30] sm:$0xff] }
   0xb   :  { %861 = vmatpush3.bf16.msra.mxu0 %v991_v9  ;;  %v1008_v26 = vld [vmem:[%s1334_s1 + $0xc8] sm:$0xff]   ;;  %v1012_v30 = vld [vmem:[%s1334_s1 + $0xc0] sm:$0xff]   ;;  %v1014_v38 = vld [vmem:[%s1334_s1 + $0x178] sm:$0xff]  }
   0xc   :  { %862 = vmatprep.subr.bf16.mxu0 %v994_v12  ;;  %v1009_v27 = vld [vmem:[%s1334_s1 + $0x88] sm:$0xff]   ;;  %v1013_v34 = vld [vmem:[%s1334_s1 + $0x80] sm:$0xff]   ;;  %v30_v39 = vld [vmem:[%s1335_s0 + $0x18] sm:$0xff] }
   0xd   :  { %883 = vmatpush3.bf16.msra.mxu1 %v993_v11  ;;  %v28_v31 = vld [vmem:[%s1335_s0 + $0x8] sm:$0xff]  ;;  %v27_v35 = vld [vmem:[%s1335_s0] sm:$0xff]  ;;  %v1015_v42 = vld [vmem:[%s1334_s1 + $0x138] sm:$0xff]  }
   0xe   :  { %884 = vmatprep.subr.bf16.mxu1 %v996_v14  ;;  %v40_v33 = vpack.c.bf16 %v34_v32, %v28_v31  ;;  %v39_v37 = vpack.c.bf16 %v33_v36, %v27_v35  ;;  %v36_v40 = vld [vmem:[%s1335_s0 + $0x48] sm:$0xff]  ;;  %v29_v43 = vld [vmem:[%s1335_s0 + $0x10] sm:$0xff]  ;;  %v35_v44 = vld [vmem:[%s1335_s0 + $0x40] sm:$0xff] }
   0xf   :  { %863 = vmatpush3.bf16.msra.mxu0 %v995_v13  ;;  %v42_v41 = vpack.c.bf16 %v36_v40, %v30_v39  ;;  %v41_v45 = vpack.c.bf16 %v35_v44, %v29_v43  ;;  %v1016_v46 = vld [vmem:[%s1334_s1 + $0x170] sm:$0xff]   ;;  %v1018_v48 = vld [vmem:[%s1334_s1 + $0x168] sm:$0xff]   ;;  %v1020_v50 = vld [vmem:[%s1334_s1 + $0x160] sm:$0xff]  }
  0x10   :  { %864 = vmatprep.subr.bf16.mxu0 %v998_v16  ;;  %468 = vmatprep.mubr.bf16.mxu0 %v40_v33  ;;  %v1017_v47 = vld [vmem:[%s1334_s1 + $0x130] sm:$0xff]   ;;  %v1019_v49 = vld [vmem:[%s1334_s1 + $0x128] sm:$0xff]   ;;  %v1021_v51 = vld [vmem:[%s1334_s1 + $0x120] sm:$0xff]  }
  0x11   :  { %885 = vmatpush3.bf16.msra.mxu1 %v997_v15  ;;  %509 = vmatprep.mubr.bf16.mxu1 %v42_v41  ;;  %v1022_v52 = vld [vmem:[%s1334_s1 + $0x158] sm:$0xff]   ;;  %v1024_v54 = vld [vmem:[%s1334_s1 + $0x150] sm:$0xff]   ;;  %v32_v55 = vld [vmem:[%s1335_s0 + $0x28] sm:$0xff] }
  0x12   :  { %886 = vmatprep.subr.bf16.mxu1 %v1000_v18  ;;  %v1023_v53 = vld [vmem:[%s1334_s1 + $0x118] sm:$0xff]   ;;  %v1025_v58 = vld [vmem:[%s1334_s1 + $0x110] sm:$0xff]   ;;  %v1026_v59 = vld [vmem:[%s1334_s1 + $0x148] sm:$0xff]  }
  0x13   :  { %865 = vmatpush3.bf16.msra.mxu0 %v999_v17  ;;  %v38_v56 = vld [vmem:[%s1335_s0 + $0x58] sm:$0xff]  ;;  %v1027_v60 = vld [vmem:[%s1334_s1 + $0x108] sm:$0xff]   ;;  %v1028_v61 = vld [vmem:[%s1334_s1 + $0x140] sm:$0xff]  }
  0x14   :  { %866 = vmatprep.subr.bf16.mxu0 %v1002_v20  ;;  %v44_v57 = vpack.c.bf16 %v38_v56, %v32_v55  ;;  %v1029_v62 = vld [vmem:[%s1334_s1 + $0x100] sm:$0xff]   ;;  %v37_v0 = vld [vmem:[%s1335_s0 + $0x50] sm:$0xff]  ;;  %v1030_v2 = vld [vmem:[%s1336_s5 + $0x38] sm:$0xff]  }
  0x15   :  { %887 = vmatpush3.bf16.msra.mxu1 %v1001_v19  ;;  %v31_v63 = vld [vmem:[%s1335_s0 + $0x20] sm:$0xff]  ;;  %v1031_v4 = vld [vmem:[%s1336_s5 + $0x30] sm:$0xff]   ;;  %v1032_v5 = vld [vmem:[%s1337_s3 + $0x38] sm:$0xff]  }
  0x16   :  { %888 = vmatprep.subr.bf16.mxu1 %v1004_v22  ;;  %v43_v1 = vpack.c.bf16 %v37_v0, %v31_v63  ;;  %v1033_v6 = vld [vmem:[%s1336_s5 + $0x28] sm:$0xff]   ;;  %v1034_v7 = vld [vmem:[%s1337_s3 + $0x30] sm:$0xff]   ;;  %v1035_v8 = vld [vmem:[%s1336_s5 + $0x20] sm:$0xff]  }
  0x17   :  { %867 = vmatpush3.bf16.msra.mxu0 %v1003_v21  ;;  %v1036_v9 = vld [vmem:[%s1337_s3 + $0x28] sm:$0xff]   ;;  %v1037_v10 = vld [vmem:[%s1336_s5 + $0x18] sm:$0xff]   ;;  %v1038_v11 = vld [vmem:[%s1337_s3 + $0x20] sm:$0xff]  }
  0x18   :  { %868 = vmatprep.subr.bf16.mxu0 %v1006_v24  ;;  %v1039_v12 = vld [vmem:[%s1336_s5 + $0x10] sm:$0xff]   ;;  %v1040_v13 = vld [vmem:[%s1337_s3 + $0x18] sm:$0xff]   ;;  %v1041_v14 = vld [vmem:[%s1336_s5 + $0x8] sm:$0xff]  }
  0x19   :  { %889 = vmatpush3.bf16.msra.mxu1 %v1005_v23  ;;  %v1042_v15 = vld [vmem:[%s1337_s3 + $0x10] sm:$0xff]   ;;  %v1043_v16 = vld [vmem:[%s1336_s5] sm:$0xff]   ;;  %v1044_v17 = vld [vmem:[%s1337_s3 + $0x8] sm:$0xff]  }
  0x1a   :  { %890 = vmatprep.subr.bf16.mxu1 %v1008_v26  ;;  %v578_v18 = vld [vmem:[%s1338_s4] sm:$0xff]  ;;  %v579_v19 = vld [vmem:[%s1338_s4 + $0x8] sm:$0xff] }
  0x1b   :  { %869 = vmatpush3.bf16.msra.mxu0 %v1007_v25  ;;  %v580_v20 = vpack.c.bf16 %v579_v19, %v578_v18  ;;  %v1045_v21 = vld [vmem:[%s1337_s3] sm:$0xff]  }
  0x1c   :  { %870 = vmatprep.subr.bf16.mxu0 %v1010_v28  ;;  %v855_v55 = vld [vmem:[%s1340_s6] ss:$0 sm:$0xff] }
  0x1d   :  { %891 = vmatpush3.bf16.msra.mxu1 %v1009_v27 }
  0x1e   :  { %892 = vmatprep.subr.bf16.mxu1 %v1012_v30  ;;  %v790_v30 = vld [vmem:[%s1339_s2] ss:$0 sm:$0xff] }
  0x1f   :  { %871 = vmatpush3.bf16.msra.mxu0 %v1011_v29 }
  0x20   :  { %900 = vmatprep.subr.bf16.mxu0 %v1014_v38 }
  0x21   :  { %893 = vmatpush3.bf16.msra.mxu1 %v1013_v34 }
  0x22   :  { %469 = vmatmul.mubr.bf16.vlgmr.msra.gmra.mxu0 %v39_v37  ;;  %940 = vmatprep.subr.bf16.mxu1 %v1046_v3 }
  0x23   :  { %901 = vmatpush3.bf16.msra.mxu0 %v1015_v42  ;;  %550 = vmatprep.mubr.bf16.mxu0 %v44_v57 }
  0x24   :  { %510 = vmatmul.mubr.bf16.vlgmr.msra.gmra.mxu1 %v41_v45  ;;  %902 = vmatprep.subr.bf16.mxu0 %v1016_v46 }
  0x25   :  { %941 = vmatpush3.bf16.msra.mxu1 %v1030_v2  ;;  %956 = vmatprep.mubr.msk.bf16.mxu1 %vm1047_vm0, %v1046_v3 }
  0x26   :  { %942 = vmatprep.subr.bf16.mxu1 %v1046_v3 }
  0x27   :  { %903 = vmatpush3.bf16.msra.mxu0 %v1017_v47 }
  0x28   :  { %904 = vmatprep.subr.bf16.mxu0 %v1018_v48 }
  0x29   :  { %943 = vmatpush3.bf16.msra.mxu1 %v1031_v4 }
  0x2a   :  { %944 = vmatprep.subr.bf16.mxu1 %v1046_v3 }
  0x2b   :  { %905 = vmatpush3.bf16.msra.mxu0 %v1019_v49 }
  0x2c   :  { %906 = vmatprep.subr.bf16.mxu0 %v1020_v50 }
  0x2d   :  { %945 = vmatpush3.bf16.msra.mxu1 %v1033_v6 }
  0x2e   :  { %946 = vmatprep.subr.bf16.mxu1 %v1046_v3 }
  0x2f   :  { %907 = vmatpush3.bf16.msra.mxu0 %v1021_v51 }
  0x30   :  { %908 = vmatprep.subr.bf16.mxu0 %v1022_v52 }
  0x31   :  { %947 = vmatpush3.bf16.msra.mxu1 %v1035_v8 }
  0x32   :  { %948 = vmatprep.subr.bf16.mxu1 %v1046_v3 }
  0x33   :  { %909 = vmatpush3.bf16.msra.mxu0 %v1023_v53 }
  0x34   :  { %910 = vmatprep.subr.bf16.mxu0 %v1024_v54 }
  0x35   :  { %949 = vmatpush3.bf16.msra.mxu1 %v1037_v10 }
  0x36   :  { %950 = vmatprep.subr.bf16.mxu1 %v1046_v3 }
  0x37   :  { %911 = vmatpush3.bf16.msra.mxu0 %v1025_v58 }
  0x38   :  { %912 = vmatprep.subr.bf16.mxu0 %v1026_v59 }
  0x39   :  { %951 = vmatpush3.bf16.msra.mxu1 %v1039_v12 }
  0x3a   :  { %952 = vmatprep.subr.bf16.mxu1 %v1046_v3 }
  0x3b   :  { %913 = vmatpush3.bf16.msra.mxu0 %v1027_v60 }
  0x3c   :  { %914 = vmatprep.subr.bf16.mxu0 %v1028_v61 }
  0x3d   :  { %953 = vmatpush3.bf16.msra.mxu1 %v1041_v14 }
  0x3e   :  { %954 = vmatprep.subr.bf16.mxu1 %v1046_v3 }
  0x3f   :  { %915 = vmatpush3.bf16.msra.mxu0 %v1029_v62 }
  0x40   :  { %960 = vmatprep.subr.bf16.mxu0 %v1046_v3 }
  0x41   :  { %955 = vmatpush3.bf16.msra.mxu1 %v1043_v16 }
  0x42   :  { %551 = vmatmul.mubr.bf16.vlgmr.msra.gmra.mxu0 %v43_v1 }
  0x43   :  { %961 = vmatpush3.bf16.msra.mxu0 %v1032_v5  ;;  %976 = vmatprep.mubr.msk.bf16.mxu0 %vm1047_vm0, %v1046_v3 }
  0x44   :  { %962 = vmatprep.subr.bf16.mxu0 %v1046_v3  ;;  %957 = vmatmul.mubr.bf16.vlgmr.msra.gmra.mxu1 %v580_v20 }
  0x47   :  { %963 = vmatpush3.bf16.msra.mxu0 %v1034_v7 }
  0x48   :  { %964 = vmatprep.subr.bf16.mxu0 %v1046_v3 }
  0x4b   :  { %965 = vmatpush3.bf16.msra.mxu0 %v1036_v9 }
  0x4c   :  { %966 = vmatprep.subr.bf16.mxu0 %v1046_v3 }
  0x4f   :  { %967 = vmatpush3.bf16.msra.mxu0 %v1038_v11 }
  0x50   :  { %968 = vmatprep.subr.bf16.mxu0 %v1046_v3 }
  0x53   :  { %969 = vmatpush3.bf16.msra.mxu0 %v1040_v13 }
  0x54   :  { %970 = vmatprep.subr.bf16.mxu0 %v1046_v3 }
  0x57   :  { %971 = vmatpush3.bf16.msra.mxu0 %v1042_v15 }
  0x58   :  { %972 = vmatprep.subr.bf16.mxu0 %v1046_v3 }
  0x5b   :  { %973 = vmatpush3.bf16.msra.mxu0 %v1044_v17 }
  0x5c   :  { %974 = vmatprep.subr.bf16.mxu0 %v1046_v3 }
  0x5f   :  { %975 = vmatpush3.bf16.msra.mxu0 %v1045_v21 }
  0xe2   :  { %v872_v22 = vpop.f32.mrf.mxu0 }
  0xe4   :  { %v873_v23 = vpop.f32.mrf.mxu0  ;;  %v894_v24 = vpop.f32.mrf.mxu1 }
  0xe5   :  { %v874_v29 = vadd.f32 %v873_v23, %v872_v22 }
  0xe6   :  { %v875_v25 = vpop.f32.mrf.mxu0  ;;  %v895_v26 = vpop.f32.mrf.mxu1 }
  0xe7   :  { %v471_v34 = vadd.f32 %v874_v29, %v790_v30  ;;  %v896_v35 = vadd.f32 %v895_v26, %v894_v24 }
  0xe8   :  { %v876_v27 = vpop.f32.mrf.mxu0  ;;  %v897_v28 = vpop.f32.mrf.mxu1 }
  0xe9   :  { %v877_v31 = vadd.f32 %v876_v27, %v875_v25  ;;  %v512_v41 = vadd.f32 %v896_v35, %v471_v34 }
  0xea   :  { %v898_v32 = vpop.f32.mrf.mxu1 }
  0xeb   :  { %v474_v37 = vadd.f32 %v877_v31, %v790_v30  ;;  %v899_v38 = vadd.f32 %v898_v32, %v897_v28 }
  0xed   :  { %v515_v43 = vadd.f32 %v899_v38, %v474_v37 }
 0x102   :  { %v916_v33 = vpop.f32.mrf.mxu0 }
 0x104   :  { %v917_v36 = vpop.f32.mrf.mxu0  ;;  %v679_v50 = vpop.f32.mrf.mxu1 }
 0x105   :  { %v918_v39 = vadd.f32 %v917_v36, %v916_v33 }
 0x106   :  { %v919_v40 = vpop.f32.mrf.mxu0  ;;  %v958_v51 = vpop.f32.mrf.mxu1 }
 0x107   :  { %v553_v44 = vadd.f32 %v918_v39, %v512_v41 }
 0x108   :  { %v920_v42 = vpop.f32.mrf.mxu0  ;;  %v682_v52 = vpop.f32.mrf.mxu1 }
 0x109   :  { %v921_v45 = vadd.f32 %v920_v42, %v919_v40  ;;  %v559_v47 = vmax.f32 %v553_v44, 0.0 }
 0x10a   :  { %v959_v53 = vpop.f32.mrf.mxu1 }
 0x10b   :  { %v556_v46 = vadd.f32 %v921_v45, %v515_v43 }
 0x10d   :  { %v560_v48 = vmax.f32 %v556_v46, 0.0 }
 0x10f   :  { %v561_v49 = vpack.c.bf16 %v560_v48, %v559_v47 }
 0x111   :  { %977 = vmatmul.mubr.bf16.vlgmr.msra.gmra.mxu0 %v561_v49 }
 0x1d1   :  { %v768_v54 = vpop.f32.mrf.mxu0 }
 0x1d2   :  { %v769_v56 = vadd.f32 %v768_v54, %v679_v50 }
 0x1d3   :  { %v978_v57 = vpop.f32.mrf.mxu0 }
 0x1d4   :  { %v782_v58 = vadd.f32 %v855_v55, %v769_v56 }
 0x1d5   :  { %v771_v59 = vpop.f32.mrf.mxu0 }
 0x1d6   :  { %784 = vst [vmem:[%s1341_s7] sm:$0xff] %v782_v58  ;;  %v772_v60 = vadd.f32 %v771_v59, %v682_v52 }
 0x1d7   :  { %v979_v61 = vpop.f32.mrf.mxu0 }
 0x1d8   :  { %v783_v62 = vadd.f32 %v855_v55, %v772_v60 }
 0x1da   :  { %785 = vst [vmem:[%s1341_s7 + $0x8] sm:$0xff] %v783_v62 }

// kernel: worldmodel_forward.7
= control target key start
LH: loop header
LB: loop body
LE: loop exit
PB: predicated region body
PF: predicated region fallthrough
CT: control target
= control target key end

     0   :  { %v219_v0 = vmov 0.0   ;;  %vm220_vm0 = vmmov 0   ;;  %v144_v12 = vlaneseq  ;;  %s299_s1 = inlined_call_operand.vmem [shape: bf16[128,128], index: 1, kind: input, shape index: {}]   ;;  %s300_s0 = inlined_call_operand.vmem [shape: f32[16,128], index: 0, kind: input, shape index: {}]   ;;  %s301_s2 = inlined_call_operand.vmem [shape: f32[1,128], index: 2, kind: input, shape index: {}]   ;;  %s302_s3 = inlined_call_operand.vmem [shape: f32[16,128], index: 3, kind: input, shape index: {}]   ;;  %s303_s4 = inlined_call_operand.vmem [shape: f32[16,128], index: 4, kind: output, shape index: {0}]   ;;  %s304_s5 = inlined_call_operand.vmem [shape: f32[8,128], index: 5, kind: output, shape index: {1}]  }
   0x1   :  { %189 = vmatprep.subr.bf16.mxu0 %v219_v0  ;;  %v211_v1 = vld [vmem:[%s299_s1 + $0x38] sm:$0xff]   ;;  %205 = vmatprep.mubr.msk.bf16.mxu0 %vm220_vm0, %v219_v0  ;;  %v212_v2 = vld [vmem:[%s299_s1 + $0x30] sm:$0xff]   ;;  %v213_v3 = vld [vmem:[%s299_s1 + $0x28] sm:$0xff]  }
   0x2   :  { %190 = vmatpush3.bf16.msra.mxu0 %v211_v1  ;;  %v214_v4 = vld [vmem:[%s299_s1 + $0x20] sm:$0xff]   ;;  %v215_v5 = vld [vmem:[%s299_s1 + $0x18] sm:$0xff]   ;;  %v216_v6 = vld [vmem:[%s299_s1 + $0x10] sm:$0xff]   ;;  %v145_v16 = vand.u32 127, %v144_v12 }
   0x3   :  { %191 = vmatprep.subr.bf16.mxu0 %v219_v0  ;;  %v217_v7 = vld [vmem:[%s299_s1 + $0x8] sm:$0xff]   ;;  %v218_v8 = vld [vmem:[%s299_s1] sm:$0xff]  }
   0x4   :  { %v20_v9 = vld [vmem:[%s300_s0] sm:$0xff]  ;;  %v21_v10 = vld [vmem:[%s300_s0 + $0x8] sm:$0xff]  ;;  %vm148_vm1 = vcmp.lt.s32.totalorder %v145_v16, 2 }
   0x5   :  { %v22_v11 = vpack.c.bf16 %v21_v10, %v20_v9  ;;  %v171_v13 = vld [vmem:[%s301_s2] ss:$0 sm:$0xff]  ;;  %v138_v21 = vld [vmem:[%s302_s3 + $0x8] sm:$0xff] }
   0x6   :  { %192 = vmatpush3.bf16.msra.mxu0 %v212_v2  ;;  %v137_v15 = vld [vmem:[%s302_s3] sm:$0xff] }
   0x7   :  { %193 = vmatprep.subr.bf16.mxu0 %v219_v0 }
   0xa   :  { %194 = vmatpush3.bf16.msra.mxu0 %v213_v3 }
   0xb   :  { %195 = vmatprep.subr.bf16.mxu0 %v219_v0 }
   0xe   :  { %196 = vmatpush3.bf16.msra.mxu0 %v214_v4 }
   0xf   :  { %197 = vmatprep.subr.bf16.mxu0 %v219_v0 }
  0x12   :  { %198 = vmatpush3.bf16.msra.mxu0 %v215_v5 }
  0x13   :  { %199 = vmatprep.subr.bf16.mxu0 %v219_v0 }
  0x16   :  { %200 = vmatpush3.bf16.msra.mxu0 %v216_v6 }
  0x17   :  { %201 = vmatprep.subr.bf16.mxu0 %v219_v0 }
  0x1a   :  { %202 = vmatpush3.bf16.msra.mxu0 %v217_v7 }
  0x1b   :  { %203 = vmatprep.subr.bf16.mxu0 %v219_v0 }
  0x1e   :  { %204 = vmatpush3.bf16.msra.mxu0 %v218_v8 }
  0x21   :  { %206 = vmatmul.mubr.bf16.vlgmr.msra.gmra.mxu0 %v22_v11 }
  0xe1   :  { %v128_v14 = vpop.f32.mrf.mxu0 }
  0xe2   :  { %v129_v17 = vadd.f32 %v171_v13, %v128_v14 }
  0xe3   :  { %v207_v18 = vpop.f32.mrf.mxu0 }
  0xe4   :  { %135 = vst [vmem:[%s303_s4] sm:$0xff] %v129_v17  ;;  %v139_v19 = vsub.f32 %v129_v17, %v137_v15 }
  0xe5   :  { %v131_v20 = vpop.f32.mrf.mxu0 }
  0xe6   :  { %v132_v22 = vadd.f32 %v171_v13, %v131_v20  ;;  %v141_v23 = vmul.f32 %v139_v19, %v139_v19 }
  0xe7   :  { %v208_v24 = vpop.f32.mrf.mxu0 }
  0xe8   :  { %136 = vst [vmem:[%s303_s4 + $0x8] sm:$0xff] %v132_v22  ;;  %v140_v25 = vsub.f32 %v132_v22, %v138_v21  ;;  %v149_v26 = vsel %vm148_vm1, %v141_v23, 0.0 }
  0xe9   :  { %151 = vadd.xlane.f32.xlu0 %v149_v26 }
  0xea   :  { %v142_v27 = vmul.f32 %v140_v25, %v140_v25 }
  0xec   :  { %v150_v28 = vsel %vm148_vm1, %v142_v27, 0.0 }
  0xed   :  { %153 = vadd.xlane.f32.xlu0 %v150_v28 }
 0x172   :  { %v152_v29 = vpop.xlane.xlu0 %151 }
 0x176   :  { %v154_v30 = vpop.xlane.xlu0 %153 }
 0x177   :  { %v155_v31 = vadd.f32 %v154_v30, %v152_v29 }
 0x179   :  { %v156_v32 = vrot.slane %v155_v31, 4 }
 0x17b   :  { %v157_v33 = vadd.f32 %v156_v32, %v155_v31 }
 0x17d   :  { %v158_v34 = vrot.slane %v157_v33, 2 }
 0x17f   :  { %v159_v35 = vadd.f32 %v158_v34, %v157_v33 }
 0x181   :  { %v160_v36 = vrot.slane %v159_v35, 1 }
 0x183   :  { %v161_v37 = vadd.f32 %v160_v36, %v159_v35 }
 0x185   :  { %162 = vst [vmem:[%s304_s5] sm:$0xff] %v161_v37 }

</bundles_post_ra>
